<compile_context>
chip_gen: v7x
topology: tpu7x:2x2x1
jax: 0.10.0
libtpu: 0.0.40
codegen_flags: <defaults>
</compile_context>

<pallas_src>
import functools
import math

import jax
import jax.numpy as jnp
from jax import lax
from jax.experimental import pallas as pl
from jax.experimental.pallas import tpu as pltpu

INF = 10000000000.0
_GELU_C = math.sqrt(2.0 / math.pi)

# Tile caps (demo shapes degenerate to full arrays, always a legal block shape).
_TM_CAP = 256     # rows (B*T) per tile
_TN_CAP = 512     # output-feature columns per tile
_TK_CAP = 512     # contraction-dim slice per tile
_TQ_CAP = 256     # query == key/value rows per attention tile (fills 256-MXU)


def _pick_tile(dim, cap, align):
    """Largest tile <= cap dividing `dim`; prefer 256-aligned (fills the 256x256
    MXU on v6e/v7x), then 128, then `align`.  Falls back to the full dim."""
    if dim <= cap:
        return dim
    for a in (256, 128, align):
        if a > cap:
            continue
        t = (cap // a) * a
        while t >= a:
            if dim % t == 0:
                return t
            t -= a
    return dim


# ----------------------------- Pallas kernels ------------------------------

def _tf_layernorm_f32(x, g, b, std_eps):
    # TF-style LayerNorm (matches the reference): UNBIASED std (N-1), eps added
    # to the std (not the variance).  Always in f32.
    d = x.shape[-1]
    u = jnp.mean(x, axis=-1, keepdims=True)
    c = x - u
    s = jnp.sqrt(jnp.sum(c * c, axis=-1, keepdims=True) / (d - 1))
    return g * (c / (s + std_eps)) + b


def _layernorm_kernel(x_ref, g_ref, b_ref, o_ref, *, std_eps):
    x = x_ref[...].astype(jnp.float32)
    y = _tf_layernorm_f32(x, g_ref[...].astype(jnp.float32),
                          b_ref[...].astype(jnp.float32), std_eps)
    o_ref[...] = y.astype(o_ref.dtype)


def _ln_matmul_kernel(x_ref, g_ref, b_ref, w_ref, bias_ref, o_ref, xn_ref,
                      *, std_eps, activation):
    # Fused: LayerNorm (f32, computed ONCE per row tile into xn_ref) -> matmul
    # + bias [+ gelu in f32] for each output-column tile j.
    @pl.when(pl.program_id(1) == 0)
    def _ln():
        x = x_ref[...].astype(jnp.float32)
        xn = _tf_layernorm_f32(x, g_ref[...].astype(jnp.float32),
                               b_ref[...].astype(jnp.float32), std_eps)
        xn_ref[...] = xn.astype(xn_ref.dtype)

    y = jnp.dot(xn_ref[...], w_ref[...], preferred_element_type=jnp.float32)
    y = y + bias_ref[...].astype(jnp.float32)
    if activation == "gelu":
        y = 0.5 * y * (1.0 + jnp.tanh(_GELU_C * (y + 0.044715 * y ** 3)))
    o_ref[...] = y.astype(o_ref.dtype)


def _matmul_bias_resid_kernel(x_ref, w_ref, bias_ref, r_ref, o_ref, acc_ref):
    # Tiled matmul with K-reduction accumulator; bias + residual fused into the
    # finalize step (attention c_proj and MLP c_proj).
    @pl.when(pl.program_id(2) == 0)
    def _init():
        acc_ref[...] = jnp.zeros_like(acc_ref)

    acc_ref[...] += jnp.dot(x_ref[...], w_ref[...],
                            preferred_element_type=jnp.float32)

    @pl.when(pl.program_id(2) == pl.num_programs(2) - 1)
    def _finalize():
        o_ref[...] = (acc_ref[...] + bias_ref[...].astype(jnp.float32)
                      + r_ref[...].astype(jnp.float32)).astype(o_ref.dtype)


def _flash_attn_kernel(q_ref, k_ref, v_ref, o_ref, m_sc, l_sc, acc_sc,
                       *, sm_scale):
    # One (batch*head) per grid point; blocks q (1, t, Dh), k/v (1, t, Dh),
    # out (1, t, Dh).  Online softmax over the kv-tile axis; no (T, T) score
    # matrix materialized, no lane slicing in the inner loop.
    qi = pl.program_id(1)
    ki = pl.program_id(2)
    tq = q_ref.shape[1]
    tk = k_ref.shape[1]

    @pl.when(ki == 0)
    def _init():
        m_sc[...] = jnp.full(m_sc.shape, -INF, m_sc.dtype)
        l_sc[...] = jnp.zeros_like(l_sc)
        acc_sc[...] = jnp.zeros_like(acc_sc)

    def _update(apply_mask):
        q = q_ref[0]                      # (tq, Dh), native dtype for the MXU
        k = k_ref[0]                      # (tk, Dh)
        v = v_ref[0]                      # (tk, Dh)
        # q @ k^T: contraction over Dh on the MXU (K never transposed in HBM).
        s = lax.dot_general(q, k, dimension_numbers=(((1,), (1,)), ((), ())),
                            preferred_element_type=jnp.float32)
        s = s * sm_scale
        if apply_mask:
            # Matches the reference `w * b - INF * (1 - b)` masking; only built
            # on the diagonal tile.
            row = qi * tq + lax.broadcasted_iota(jnp.int32, (tq, tk), 0)
            col = ki * tk + lax.broadcasted_iota(jnp.int32, (tq, tk), 1)
            s = jnp.where(col <= row, s, -INF)
        m_prev = m_sc[...]
        m_new = jnp.maximum(m_prev, jnp.max(s, axis=-1, keepdims=True))
        alpha = jnp.exp(m_prev - m_new)
        p = jnp.exp(s - m_new)
        l_sc[...] = alpha * l_sc[...] + jnp.sum(p, axis=-1, keepdims=True)
        acc_sc[...] = alpha * acc_sc[...] + jnp.dot(p.astype(v.dtype), v,
                                                    preferred_element_type=jnp.float32)
        m_sc[...] = m_new

    # Interior tiles (strictly below the diagonal): no mask work needed.
    @pl.when(ki < qi)
    def _interior():
        _update(False)

    # Diagonal tile: masked update, then finalize (last contributing kv step;
    # tiles with ki > qi never compute and -- thanks to the clamped index map --
    # are never even DMA'd).
    @pl.when(ki == qi)
    def _diag_and_finalize():
        _update(True)
        inv_l = pl.reciprocal(l_sc[...], approx=True)      # EUP slot, ~free
        o_ref[0] = (acc_sc[...] * inv_l).astype(o_ref.dtype)


# ----------------------------- kernel wrappers ------------------------------

def layernorm(x, g, b, *, std_eps):
    n, d = x.shape
    tm = _pick_tile(n, _TM_CAP, 8)
    kern = functools.partial(_layernorm_kernel, std_eps=std_eps)
    return pl.pallas_call(
        kern,
        grid=(n // tm,),
        in_specs=[
            pl.BlockSpec((tm, d), lambda i: (i, 0)),
            pl.BlockSpec((1, d), lambda i: (0, 0)),
            pl.BlockSpec((1, d), lambda i: (0, 0)),
        ],
        out_specs=pl.BlockSpec((tm, d), lambda i: (i, 0)),
        out_shape=jax.ShapeDtypeStruct((n, d), x.dtype),
        compiler_params=pltpu.CompilerParams(dimension_semantics=("parallel",)),
    )(x, g.reshape(1, d), b.reshape(1, d))


def ln_linear(x, g, b, w, bias, *, std_eps, activation=None):
    """LayerNorm(x) @ w + bias [+ gelu]; LN computed once per row tile."""
    n, d = x.shape
    dout = w.shape[1]
    tm = _pick_tile(n, _TM_CAP, 8)
    tn = _pick_tile(dout, _TN_CAP, 128)
    kern = functools.partial(_ln_matmul_kernel, std_eps=std_eps,
                             activation=activation)
    return pl.pallas_call(
        kern,
        grid=(n // tm, dout // tn),
        in_specs=[
            pl.BlockSpec((tm, d), lambda i, j: (i, 0)),
            pl.BlockSpec((1, d), lambda i, j: (0, 0)),
            pl.BlockSpec((1, d), lambda i, j: (0, 0)),
            pl.BlockSpec((d, tn), lambda i, j: (0, j)),
            pl.BlockSpec((1, tn), lambda i, j: (0, j)),
        ],
        out_specs=pl.BlockSpec((tm, tn), lambda i, j: (i, j)),
        out_shape=jax.ShapeDtypeStruct((n, dout), x.dtype),
        scratch_shapes=[pltpu.VMEM((tm, d), w.dtype)],   # normalized-x reuse
        compiler_params=pltpu.CompilerParams(
            # j MUST be "arbitrary": the LN scratch is written at j == 0 only.
            dimension_semantics=("parallel", "arbitrary")),
    )(x, g.reshape(1, d), b.reshape(1, d), w, bias.reshape(1, dout))


def linear_bias_residual(x, w, bias, residual):
    n, kdim = x.shape
    dout = w.shape[1]
    tm = _pick_tile(n, _TM_CAP, 8)
    tn = _pick_tile(dout, _TN_CAP, 128)
    tk = _pick_tile(kdim, _TK_CAP, 128)
    return pl.pallas_call(
        _matmul_bias_resid_kernel,
        grid=(n // tm, dout // tn, kdim // tk),
        in_specs=[
            pl.BlockSpec((tm, tk), lambda i, j, kk: (i, kk)),
            pl.BlockSpec((tk, tn), lambda i, j, kk: (kk, j)),
            pl.BlockSpec((1, tn), lambda i, j, kk: (0, j)),
            pl.BlockSpec((tm, tn), lambda i, j, kk: (i, j)),
        ],
        out_specs=pl.BlockSpec((tm, tn), lambda i, j, kk: (i, j)),
        out_shape=jax.ShapeDtypeStruct((n, dout), x.dtype),
        scratch_shapes=[pltpu.VMEM((tm, tn), jnp.float32)],
        compiler_params=pltpu.CompilerParams(
            dimension_semantics=("parallel", "parallel", "arbitrary")),
    )(x, w, bias.reshape(1, dout), residual)


def causal_attention(q, k, v):
    # q, k, v: (B*H, T, Dh).  Head folded into the leading (parallel) grid axis.
    bh, t, dh = q.shape
    tile = _pick_tile(t, _TQ_CAP, 8)      # tq == tk (required by the clamp below)
    kern = functools.partial(_flash_attn_kernel, sm_scale=1.0 / math.sqrt(dh))

    def q_map(b, qi, ki):
        return (b, qi, 0)

    def kv_map(b, qi, ki):
        # Clamp: kv tiles strictly above the causal diagonal re-target the
        # already-resident diagonal block -> Pallas skips the DMA entirely.
        return (b, jnp.minimum(ki, qi), 0)

    return pl.pallas_call(
        kern,
        grid=(bh, t // tile, t // tile),
        in_specs=[
            pl.BlockSpec((1, tile, dh), q_map),
            pl.BlockSpec((1, tile, dh), kv_map),
            pl.BlockSpec((1, tile, dh), kv_map),
        ],
        out_specs=pl.BlockSpec((1, tile, dh), q_map),
        out_shape=jax.ShapeDtypeStruct((bh, t, dh), q.dtype),
        scratch_shapes=[
            pltpu.VMEM((tile, 1), jnp.float32),    # running max m
            pltpu.VMEM((tile, 1), jnp.float32),    # running sum l
            pltpu.VMEM((tile, dh), jnp.float32),   # output accumulator
        ],
        compiler_params=pltpu.CompilerParams(
            dimension_semantics=("parallel", "parallel", "arbitrary")),
    )(q, k, v)


# ----------------------------- model definition -----------------------------

def init_params(key, *, types_vocab, values_vocab, n_layer, n_embd):
    def normal(k, shape, std=0.02):
        return (std * jax.random.normal(k, shape)).astype(jnp.float32)

    keys = iter(jax.random.split(key, 2 + 4 * n_layer))
    ones = jnp.ones((n_embd,), jnp.float32)
    zeros = jnp.zeros((n_embd,), jnp.float32)
    params = {
        "wte_types": normal(next(keys), (types_vocab, n_embd)),
        "wte_values": normal(next(keys), (values_vocab, n_embd)),
        "ln_f_g": ones,
        "ln_f_b": zeros,
        "blocks": [],
    }
    for _ in range(n_layer):
        blk = {
            "ln1_g": ones, "ln1_b": zeros,
            # Fused c_attn: Linear(n_embd, 3*n_embd), columns ordered [q | k | v].
            "attn_w": normal(next(keys), (n_embd, 3 * n_embd)),
            "attn_b": jnp.zeros((3 * n_embd,), jnp.float32),
            "proj_w": normal(next(keys), (n_embd, n_embd)), "proj_b": zeros,
            "ln2_g": ones, "ln2_b": zeros,
            "fc_w": normal(next(keys), (n_embd, 4 * n_embd)),
            "fc_b": jnp.zeros((4 * n_embd,), jnp.float32),
            "fc_proj_w": normal(next(keys), (4 * n_embd, n_embd)),
            "fc_proj_b": zeros,
        }
        params["blocks"].append(blk)
    return params


def gpt2_forward(params, types, values, *, n_head, layer_norm_epsilon=1e-6,
                 compute_dtype=jnp.float32):
    B, T = values.shape
    D = params["wte_values"].shape[1]
    Dh = D // n_head
    N = B * T

    # Token embeddings (gathers kept as JAX glue).
    h = (params["wte_types"][types] + params["wte_values"][values]).astype(jnp.float32)
    # TODO(synk): PositionalEncodings class is not provided; with use_sin_pos_enc=False,
    # use_pos_embed=False and tree_pos_enc_meta=None it reduces to embed-dropout,
    # which is identity in eval mode.
    x = h.reshape(N, D).astype(compute_dtype)

    cd = lambda a: a.astype(compute_dtype)   # matmul operands in compute dtype

    def split_heads(t2d):   # (N, D) -> (B*H, T, Dh)   [layout glue, XLA]
        return (t2d.reshape(B, T, n_head, Dh)
                    .transpose(0, 2, 1, 3)
                    .reshape(B * n_head, T, Dh))

    def merge_heads(t3d):   # (B*H, T, Dh) -> (N, D)
        return (t3d.reshape(B, n_head, T, Dh)
                    .transpose(0, 2, 1, 3)
                    .reshape(N, D))

    for blk in params["blocks"]:
        # ---- attention sub-block: LN1 + fused QKV; flash attention; proj + residual
        qkv = ln_linear(x, blk["ln1_g"], blk["ln1_b"],
                        cd(blk["attn_w"]), blk["attn_b"],
                        std_eps=layer_norm_epsilon)
        q = split_heads(qkv[:, 0 * D:1 * D])
        k = split_heads(qkv[:, 1 * D:2 * D])
        v = split_heads(qkv[:, 2 * D:3 * D])
        a = merge_heads(causal_attention(q, k, v))
        x = linear_bias_residual(a, cd(blk["proj_w"]), blk["proj_b"], x)
        # ---- MLP sub-block: LN2 + FC + gelu fused; proj + bias + residual fused
        hmid = ln_linear(x, blk["ln2_g"], blk["ln2_b"],
                         cd(blk["fc_w"]), blk["fc_b"],
                         std_eps=layer_norm_epsilon, activation="gelu")
        x = linear_bias_residual(hmid, cd(blk["fc_proj_w"]),
                                 blk["fc_proj_b"], x)

    x = layernorm(x, params["ln_f_g"], params["ln_f_b"], std_eps=layer_norm_epsilon)
    return x.reshape(B, T, D)


# ----------------------------- pure-JAX reference ---------------------------

def _ref_layernorm(x, g, b, eps):
    u = jnp.mean(x, axis=-1, keepdims=True)
    c = x - u
    s = jnp.sqrt(jnp.sum(c * c, axis=-1, keepdims=True) / (x.shape[-1] - 1))
    return g * (c / (s + eps)) + b


def _ref_gelu(x):
    return 0.5 * x * (1 + jnp.tanh(math.sqrt(2 / math.pi) * (x + 0.044715 * x ** 3)))


def gpt2_forward_ref(params, types, values, *, n_head, layer_norm_epsilon=1e-6):
    B, T = values.shape
    D = params["wte_values"].shape[1]
    Dh = D // n_head
    x = (params["wte_types"][types] + params["wte_values"][values]).astype(jnp.float32)
    mask = jnp.tril(jnp.ones((T, T), jnp.float32))
    for blk in params["blocks"]:
        a_in = _ref_layernorm(x, blk["ln1_g"], blk["ln1_b"], layer_norm_epsilon)
        qkv = a_in @ blk["attn_w"] + blk["attn_b"]
        q, k, v = jnp.split(qkv, 3, axis=-1)
        q = q.reshape(B, T, n_head, Dh).transpose(0, 2, 1, 3)
        k = k.reshape(B, T, n_head, Dh).transpose(0, 2, 3, 1)
        v = v.reshape(B, T, n_head, Dh).transpose(0, 2, 1, 3)
        w = jnp.einsum("bhik,bhkj->bhij", q, k) / math.sqrt(Dh)
        w = w * mask - INF * (1 - mask)
        p = jax.nn.softmax(w, axis=-1)
        a = jnp.einsum("bhij,bhjd->bhid", p, v).transpose(0, 2, 1, 3).reshape(B, T, D)
        a = a @ blk["proj_w"] + blk["proj_b"]
        x = x + a
        m_in = _ref_layernorm(x, blk["ln2_g"], blk["ln2_b"], layer_norm_epsilon)
        m = _ref_gelu(m_in @ blk["fc_w"] + blk["fc_b"]) @ blk["fc_proj_w"] + blk["fc_proj_b"]
        x = x + m
    return _ref_layernorm(x, params["ln_f_g"], params["ln_f_b"], layer_norm_epsilon)


# ----------------------------------- main ------------------------------------

if __name__ == "__main__":
    # Small config implied by the module: n_layer=2, n_embd=32, seq=8, n_head=4.
    B, T = 2, 8
    n_layer, n_embd, n_head = 2, 32, 4
    types_vocab, values_vocab = 11, 13

    key = jax.random.PRNGKey(0)
    kp, kt, kv = jax.random.split(key, 3)
    params = init_params(kp, types_vocab=types_vocab, values_vocab=values_vocab,
                         n_layer=n_layer, n_embd=n_embd)
    types = jax.random.randint(kt, (B, T), 0, types_vocab, dtype=jnp.int32)
    values = jax.random.randint(kv, (B, T), 0, values_vocab, dtype=jnp.int32)

    ref = gpt2_forward_ref(params, types, values, n_head=n_head)

    # f32 compute path (tolerance accommodates the approx EUP reciprocal used
    # for the softmax normalization).
    fwd_f32 = jax.jit(functools.partial(gpt2_forward, n_head=n_head,
                                        compute_dtype=jnp.float32))
    out_f32 = jax.block_until_ready(fwd_f32(params, types, values))
    assert out_f32.shape == (B, T, n_embd)
    assert bool(jnp.allclose(out_f32, ref, atol=2e-2, rtol=2e-2)), \
        "f32 kernel mismatch vs pure-JAX reference"

    # bf16 matmul path (f32 accumulation / f32 LN+softmax+gelu), looser check.
    fwd_bf16 = jax.jit(functools.partial(gpt2_forward, n_head=n_head,
                                         compute_dtype=jnp.bfloat16))
    out_bf16 = jax.block_until_ready(fwd_bf16(params, types, values))
    assert out_bf16.shape == (B, T, n_embd)
    assert bool(jnp.allclose(out_bf16.astype(jnp.float32), ref, atol=1e-1, rtol=1e-1)), \
        "bf16 kernel mismatch vs pure-JAX reference"

    print("KERNEL_OK")
</pallas_src>

<mosaic_0001>
module attributes {stable_mosaic.version = 11 : i64} {
  func.func @_ln_matmul_kernel(%arg0: i32, %arg1: i32, %arg2: memref<16x32xf32, #tpu.memory_space<vmem>>, %arg3: memref<1x32xf32, #tpu.memory_space<vmem>>, %arg4: memref<1x32xf32, #tpu.memory_space<vmem>>, %arg5: memref<32x96xf32, #tpu.memory_space<vmem>>, %arg6: memref<1x96xf32, #tpu.memory_space<vmem>>, %arg7: memref<16x96xf32, #tpu.memory_space<vmem>>, %arg8: memref<16x32xf32, #tpu.memory_space<vmem>>) attributes {dimension_semantics = [#tpu.dimension_semantics<parallel>, #tpu.dimension_semantics<arbitrary>], iteration_bounds = array<i64: 1, 1>, scalar_prefetch = 0 : i64, scratch_operands = 1 : i64, tpu.core_type = #tpu.core_type<tc>, window_params = [{transform_indices = @transform_0, window_bounds = array<i64: 16, 32>}, {pipeline_mode = #tpu.pipeline_mode<synchronous>, transform_indices = @transform_1, window_bounds = array<i64: 1, 32>}, {pipeline_mode = #tpu.pipeline_mode<synchronous>, transform_indices = @transform_2, window_bounds = array<i64: 1, 32>}, {transform_indices = @transform_3, window_bounds = array<i64: 32, 96>}, {transform_indices = @transform_4, window_bounds = array<i64: 1, 96>}, {transform_indices = @transform_5, window_bounds = array<i64: 16, 96>}]} {
    %c0_i32 = arith.constant 0 : i32
    %0 = arith.cmpi eq, %arg1, %c0_i32 : i32
    %1 = arith.extui %0 : i1 to i32
    %c0_i32_0 = arith.constant 0 : i32
    %2 = arith.cmpi ne, %1, %c0_i32_0 : i32
    scf.if %2 {
      %c0_8 = arith.constant 0 : index
      %c0_9 = arith.constant 0 : index
      %10 = vector.load %arg2[%c0_8, %c0_9] : memref<16x32xf32, #tpu.memory_space<vmem>>, vector<16x32xf32>
      %c0_10 = arith.constant 0 : index
      %c0_11 = arith.constant 0 : index
      %11 = vector.load %arg3[%c0_10, %c0_11] : memref<1x32xf32, #tpu.memory_space<vmem>>, vector<1x32xf32>
      %c0_12 = arith.constant 0 : index
      %c0_13 = arith.constant 0 : index
      %12 = vector.load %arg4[%c0_12, %c0_13] : memref<1x32xf32, #tpu.memory_space<vmem>>, vector<1x32xf32>
      %cst_14 = arith.constant dense<0.000000e+00> : vector<16xf32>
      %13 = vector.multi_reduction <add>, %10, %cst_14 [1] : vector<16x32xf32> to vector<16xf32>
      %14 = vector.shape_cast %13 : vector<16xf32> to vector<16x1xf32>
      %cst_15 = arith.constant 3.200000e+01 : f32
      %15 = vector.broadcast %cst_15 : f32 to vector<16x1xf32>
      %16 = arith.divf %14, %15 : vector<16x1xf32>
      %17 = vector.broadcast %16 : vector<16x1xf32> to vector<16x32xf32>
      %18 = arith.subf %10, %17 : vector<16x32xf32>
      %19 = arith.mulf %18, %18 : vector<16x32xf32>
      %cst_16 = arith.constant dense<0.000000e+00> : vector<16xf32>
      %20 = vector.multi_reduction <add>, %19, %cst_16 [1] : vector<16x32xf32> to vector<16xf32>
      %21 = vector.shape_cast %20 : vector<16xf32> to vector<16x1xf32>
      %cst_17 = arith.constant 3.100000e+01 : f32
      %22 = vector.broadcast %cst_17 : f32 to vector<16x1xf32>
      %23 = arith.divf %21, %22 : vector<16x1xf32>
      %24 = math.sqrt %23 : vector<16x1xf32>
      %cst_18 = arith.constant 9.99999997E-7 : f32
      %25 = vector.broadcast %cst_18 : f32 to vector<16x1xf32>
      %26 = arith.addf %24, %25 : vector<16x1xf32>
      %27 = vector.broadcast %26 : vector<16x1xf32> to vector<16x32xf32>
      %28 = arith.divf %18, %27 : vector<16x32xf32>
      %29 = vector.broadcast %11 : vector<1x32xf32> to vector<16x32xf32>
      %30 = arith.mulf %29, %28 : vector<16x32xf32>
      %31 = vector.broadcast %12 : vector<1x32xf32> to vector<16x32xf32>
      %32 = arith.addf %30, %31 : vector<16x32xf32>
      %c0_19 = arith.constant 0 : index
      %c0_20 = arith.constant 0 : index
      %33 = vector.load %arg8[%c0_19, %c0_20] : memref<16x32xf32, #tpu.memory_space<vmem>>, vector<16x32xf32>
      tpu.vector_store %arg8[%c0_19, %c0_20], %32 {strides = array<i32>} : memref<16x32xf32, #tpu.memory_space<vmem>>, vector<16x32xf32>,
    } else {
    }
    %c0 = arith.constant 0 : index
    %c0_1 = arith.constant 0 : index
    %3 = vector.load %arg8[%c0, %c0_1] : memref<16x32xf32, #tpu.memory_space<vmem>>, vector<16x32xf32>
    %c0_2 = arith.constant 0 : index
    %c0_3 = arith.constant 0 : index
    %4 = vector.load %arg5[%c0_2, %c0_3] : memref<32x96xf32, #tpu.memory_space<vmem>>, vector<32x96xf32>
    %cst = arith.constant dense<0.000000e+00> : vector<16x96xf32>
    %5 = tpu.matmul %3, %4, %cst {dimension_numbers = #tpu.dot_dimension_numbers<[1], [0], [0], [1], [0, 0, 1, 1], [], []>} : vector<16x32xf32>, vector<32x96xf32>, vector<16x96xf32> -> vector<16x96xf32>
    %c0_4 = arith.constant 0 : index
    %c0_5 = arith.constant 0 : index
    %6 = vector.load %arg6[%c0_4, %c0_5] : memref<1x96xf32, #tpu.memory_space<vmem>>, vector<1x96xf32>
    %7 = vector.broadcast %6 : vector<1x96xf32> to vector<16x96xf32>
    %8 = arith.addf %5, %7 : vector<16x96xf32>
    %c0_6 = arith.constant 0 : index
    %c0_7 = arith.constant 0 : index
    %9 = vector.load %arg7[%c0_6, %c0_7] : memref<16x96xf32, #tpu.memory_space<vmem>>, vector<16x96xf32>
    tpu.vector_store %arg7[%c0_6, %c0_7], %8 {strides = array<i32>} : memref<16x96xf32, #tpu.memory_space<vmem>>, vector<16x96xf32>,
    return
  }
  func.func @transform_0(%arg0: i32, %arg1: i32) -> (i32, i32) {
    %c0_i32 = arith.constant 0 : i32
    %c0_i32_0 = arith.constant 0 : i32
    return %arg0, %c0_i32 : i32, i32
  }
  func.func @transform_1(%arg0: i32, %arg1: i32) -> (i32, i32) {
    %c0_i32 = arith.constant 0 : i32
    %c0_i32_0 = arith.constant 0 : i32
    %c0_i32_1 = arith.constant 0 : i32
    return %c0_i32, %c0_i32_0 : i32, i32
  }
  func.func @transform_2(%arg0: i32, %arg1: i32) -> (i32, i32) {
    %c0_i32 = arith.constant 0 : i32
    %c0_i32_0 = arith.constant 0 : i32
    %c0_i32_1 = arith.constant 0 : i32
    return %c0_i32, %c0_i32_0 : i32, i32
  }
  func.func @transform_3(%arg0: i32, %arg1: i32) -> (i32, i32) {
    %c0_i32 = arith.constant 0 : i32
    %c0_i32_0 = arith.constant 0 : i32
    return %c0_i32, %arg1 : i32, i32
  }
  func.func @transform_4(%arg0: i32, %arg1: i32) -> (i32, i32) {
    %c0_i32 = arith.constant 0 : i32
    %c0_i32_0 = arith.constant 0 : i32
    return %c0_i32, %arg1 : i32, i32
  }
  func.func @transform_5(%arg0: i32, %arg1: i32) -> (i32, i32) {
    %c0_i32 = arith.constant 0 : i32
    return %arg0, %arg1 : i32, i32
  }
}

module attributes {stable_mosaic.version = 11 : i64} {
  func.func @_flash_attn_kernel(%arg0: i32, %arg1: i32, %arg2: i32, %arg3: memref<1x8x8xf32, #tpu.memory_space<vmem>>, %arg4: memref<1x8x8xf32, #tpu.memory_space<vmem>>, %arg5: memref<1x8x8xf32, #tpu.memory_space<vmem>>, %arg6: memref<1x8x8xf32, #tpu.memory_space<vmem>>, %arg7: memref<8x1xf32, #tpu.memory_space<vmem>>, %arg8: memref<8x1xf32, #tpu.memory_space<vmem>>, %arg9: memref<8x8xf32, #tpu.memory_space<vmem>>) attributes {dimension_semantics = [#tpu.dimension_semantics<parallel>, #tpu.dimension_semantics<parallel>, #tpu.dimension_semantics<arbitrary>], iteration_bounds = array<i64: 8, 1, 1>, scalar_prefetch = 0 : i64, scratch_operands = 3 : i64, tpu.core_type = #tpu.core_type<tc>, window_params = [{transform_indices = @transform_0, window_bounds = array<i64: 1, 8, 8>}, {transform_indices = @transform_1, window_bounds = array<i64: 1, 8, 8>}, {transform_indices = @transform_2, window_bounds = array<i64: 1, 8, 8>}, {transform_indices = @transform_3, window_bounds = array<i64: 1, 8, 8>}]} {
    %c0_i32 = arith.constant 0 : i32
    %0 = arith.cmpi eq, %arg2, %c0_i32 : i32
    %1 = arith.extui %0 : i1 to i32
    %c0_i32_0 = arith.constant 0 : i32
    %2 = arith.cmpi ne, %1, %c0_i32_0 : i32
    scf.if %2 {
      %cst = arith.constant -1.000000e+10 : f32
      %9 = vector.broadcast %cst : f32 to vector<8x1xf32>
      %c0 = arith.constant 0 : index
      %c0_3 = arith.constant 0 : index
      %10 = vector.load %arg7[%c0, %c0_3] : memref<8x1xf32, #tpu.memory_space<vmem>>, vector<8x1xf32>
      tpu.vector_store %arg7[%c0, %c0_3], %9 {strides = array<i32>} : memref<8x1xf32, #tpu.memory_space<vmem>>, vector<8x1xf32>,
      %cst_4 = arith.constant 0.000000e+00 : f32
      %11 = vector.broadcast %cst_4 : f32 to vector<8x1xf32>
      %c0_5 = arith.constant 0 : index
      %c0_6 = arith.constant 0 : index
      %12 = vector.load %arg8[%c0_5, %c0_6] : memref<8x1xf32, #tpu.memory_space<vmem>>, vector<8x1xf32>
      tpu.vector_store %arg8[%c0_5, %c0_6], %11 {strides = array<i32>} : memref<8x1xf32, #tpu.memory_space<vmem>>, vector<8x1xf32>,
      %cst_7 = arith.constant 0.000000e+00 : f32
      %13 = vector.broadcast %cst_7 : f32 to vector<8x8xf32>
      %c0_8 = arith.constant 0 : index
      %c0_9 = arith.constant 0 : index
      %14 = vector.load %arg9[%c0_8, %c0_9] : memref<8x8xf32, #tpu.memory_space<vmem>>, vector<8x8xf32>
      tpu.vector_store %arg9[%c0_8, %c0_9], %13 {strides = array<i32>} : memref<8x8xf32, #tpu.memory_space<vmem>>, vector<8x8xf32>,
    } else {
    }
    %3 = arith.cmpi slt, %arg2, %arg1 : i32
    %4 = arith.extui %3 : i1 to i32
    %c0_i32_1 = arith.constant 0 : i32
    %5 = arith.cmpi ne, %4, %c0_i32_1 : i32
    scf.if %5 {
      %c0 = arith.constant 0 : index
      %c0_3 = arith.constant 0 : index
      %c0_4 = arith.constant 0 : index
      %9 = vector.load %arg3[%c0, %c0_3, %c0_4] : memref<1x8x8xf32, #tpu.memory_space<vmem>>, vector<1x8x8xf32>
      %10 = vector.shape_cast %9 : vector<1x8x8xf32> to vector<8x8xf32>
      %c0_5 = arith.constant 0 : index
      %c0_6 = arith.constant 0 : index
      %c0_7 = arith.constant 0 : index
      %11 = vector.load %arg4[%c0_5, %c0_6, %c0_7] : memref<1x8x8xf32, #tpu.memory_space<vmem>>, vector<1x8x8xf32>
      %12 = vector.shape_cast %11 : vector<1x8x8xf32> to vector<8x8xf32>
      %c0_8 = arith.constant 0 : index
      %c0_9 = arith.constant 0 : index
      %c0_10 = arith.constant 0 : index
      %13 = vector.load %arg5[%c0_8, %c0_9, %c0_10] : memref<1x8x8xf32, #tpu.memory_space<vmem>>, vector<1x8x8xf32>
      %14 = vector.shape_cast %13 : vector<1x8x8xf32> to vector<8x8xf32>
      %cst = arith.constant dense<0.000000e+00> : vector<8x8xf32>
      %15 = tpu.matmul %10, %12, %cst {dimension_numbers = #tpu.dot_dimension_numbers<[1], [1], [0], [0], [0, 0, 1, 0], [], []>} : vector<8x8xf32>, vector<8x8xf32>, vector<8x8xf32> -> vector<8x8xf32>
      %cst_11 = arith.constant 0.353553385 : f32
      %16 = vector.broadcast %cst_11 : f32 to vector<8x8xf32>
      %17 = arith.mulf %15, %16 : vector<8x8xf32>
      %c0_12 = arith.constant 0 : index
      %c0_13 = arith.constant 0 : index
      %18 = vector.load %arg7[%c0_12, %c0_13] : memref<8x1xf32, #tpu.memory_space<vmem>>, vector<8x1xf32>
      %cst_14 = arith.constant dense<0xFF800000> : vector<8xf32>
      %19 = vector.multi_reduction <maximumf>, %17, %cst_14 [1] : vector<8x8xf32> to vector<8xf32>
      %20 = vector.shape_cast %19 : vector<8xf32> to vector<8x1xf32>
      %21 = arith.maximumf %18, %20 : vector<8x1xf32>
      %22 = arith.subf %18, %21 : vector<8x1xf32>
      %23 = math.exp %22 : vector<8x1xf32>
      %24 = vector.broadcast %21 : vector<8x1xf32> to vector<8x8xf32>
      %25 = arith.subf %17, %24 : vector<8x8xf32>
      %26 = math.exp %25 : vector<8x8xf32>
      %c0_15 = arith.constant 0 : index
      %c0_16 = arith.constant 0 : index
      %27 = vector.load %arg8[%c0_15, %c0_16] : memref<8x1xf32, #tpu.memory_space<vmem>>, vector<8x1xf32>
      %28 = arith.mulf %23, %27 : vector<8x1xf32>
      %cst_17 = arith.constant dense<0.000000e+00> : vector<8xf32>
      %29 = vector.multi_reduction <add>, %26, %cst_17 [1] : vector<8x8xf32> to vector<8xf32>
      %30 = vector.shape_cast %29 : vector<8xf32> to vector<8x1xf32>
      %31 = arith.addf %28, %30 : vector<8x1xf32>
      %c0_18 = arith.constant 0 : index
      %c0_19 = arith.constant 0 : index
      %32 = vector.load %arg8[%c0_18, %c0_19] : memref<8x1xf32, #tpu.memory_space<vmem>>, vector<8x1xf32>
      tpu.vector_store %arg8[%c0_18, %c0_19], %31 {strides = array<i32>} : memref<8x1xf32, #tpu.memory_space<vmem>>, vector<8x1xf32>,
      %c0_20 = arith.constant 0 : index
      %c0_21 = arith.constant 0 : index
      %33 = vector.load %arg9[%c0_20, %c0_21] : memref<8x8xf32, #tpu.memory_space<vmem>>, vector<8x8xf32>
      %34 = vector.broadcast %23 : vector<8x1xf32> to vector<8x8xf32>
      %35 = arith.mulf %34, %33 : vector<8x8xf32>
      %cst_22 = arith.constant dense<0.000000e+00> : vector<8x8xf32>
      %36 = tpu.matmul %26, %14, %cst_22 {dimension_numbers = #tpu.dot_dimension_numbers<[1], [0], [0], [1], [0, 0, 1, 1], [], []>} : vector<8x8xf32>, vector<8x8xf32>, vector<8x8xf32> -> vector<8x8xf32>
      %37 = arith.addf %35, %36 : vector<8x8xf32>
      %c0_23 = arith.constant 0 : index
      %c0_24 = arith.constant 0 : index
      %38 = vector.load %arg9[%c0_23, %c0_24] : memref<8x8xf32, #tpu.memory_space<vmem>>, vector<8x8xf32>
      tpu.vector_store %arg9[%c0_23, %c0_24], %37 {strides = array<i32>} : memref<8x8xf32, #tpu.memory_space<vmem>>, vector<8x8xf32>,
      %c0_25 = arith.constant 0 : index
      %c0_26 = arith.constant 0 : index
      %39 = vector.load %arg7[%c0_25, %c0_26] : memref<8x1xf32, #tpu.memory_space<vmem>>, vector<8x1xf32>
      tpu.vector_store %arg7[%c0_25, %c0_26], %21 {strides = array<i32>} : memref<8x1xf32, #tpu.memory_space<vmem>>, vector<8x1xf32>,
    } else {
    }
    %6 = arith.cmpi eq, %arg2, %arg1 : i32
    %7 = arith.extui %6 : i1 to i32
    %c0_i32_2 = arith.constant 0 : i32
    %8 = arith.cmpi ne, %7, %c0_i32_2 : i32
    scf.if %8 {
      %c0 = arith.constant 0 : index
      %c0_3 = arith.constant 0 : index
      %c0_4 = arith.constant 0 : index
      %9 = vector.load %arg3[%c0, %c0_3, %c0_4] : memref<1x8x8xf32, #tpu.memory_space<vmem>>, vector<1x8x8xf32>
      %10 = vector.shape_cast %9 : vector<1x8x8xf32> to vector<8x8xf32>
      %c0_5 = arith.constant 0 : index
      %c0_6 = arith.constant 0 : index
      %c0_7 = arith.constant 0 : index
      %11 = vector.load %arg4[%c0_5, %c0_6, %c0_7] : memref<1x8x8xf32, #tpu.memory_space<vmem>>, vector<1x8x8xf32>
      %12 = vector.shape_cast %11 : vector<1x8x8xf32> to vector<8x8xf32>
      %c0_8 = arith.constant 0 : index
      %c0_9 = arith.constant 0 : index
      %c0_10 = arith.constant 0 : index
      %13 = vector.load %arg5[%c0_8, %c0_9, %c0_10] : memref<1x8x8xf32, #tpu.memory_space<vmem>>, vector<1x8x8xf32>
      %14 = vector.shape_cast %13 : vector<1x8x8xf32> to vector<8x8xf32>
      %cst = arith.constant dense<0.000000e+00> : vector<8x8xf32>
      %15 = tpu.matmul %10, %12, %cst {dimension_numbers = #tpu.dot_dimension_numbers<[1], [1], [0], [0], [0, 0, 1, 0], [], []>} : vector<8x8xf32>, vector<8x8xf32>, vector<8x8xf32> -> vector<8x8xf32>
      %cst_11 = arith.constant 0.353553385 : f32
      %16 = vector.broadcast %cst_11 : f32 to vector<8x8xf32>
      %17 = arith.mulf %15, %16 : vector<8x8xf32>
      %c8_i32 = arith.constant 8 : i32
      %18 = arith.muli %arg1, %c8_i32 : i32
      %19 = tpu.iota {dimensions = array<i32: 0>} : vector<8x8xi32>
      %20 = vector.broadcast %18 : i32 to vector<8x8xi32>
      %21 = arith.addi %20, %19 : vector<8x8xi32>
      %c8_i32_12 = arith.constant 8 : i32
      %22 = arith.muli %arg2, %c8_i32_12 : i32
      %23 = tpu.iota {dimensions = array<i32: 1>} : vector<8x8xi32>
      %24 = vector.broadcast %22 : i32 to vector<8x8xi32>
      %25 = arith.addi %24, %23 : vector<8x8xi32>
      %26 = arith.cmpi sle, %25, %21 : vector<8x8xi32>
      %cst_13 = arith.constant -1.000000e+10 : f32
      %27 = vector.broadcast %cst_13 : f32 to vector<8x8xf32>
      %28 = arith.select %26, %17, %27 : vector<8x8xi1>, vector<8x8xf32>
      %c0_14 = arith.constant 0 : index
      %c0_15 = arith.constant 0 : index
      %29 = vector.load %arg7[%c0_14, %c0_15] : memref<8x1xf32, #tpu.memory_space<vmem>>, vector<8x1xf32>
      %cst_16 = arith.constant dense<0xFF800000> : vector<8xf32>
      %30 = vector.multi_reduction <maximumf>, %28, %cst_16 [1] : vector<8x8xf32> to vector<8xf32>
      %31 = vector.shape_cast %30 : vector<8xf32> to vector<8x1xf32>
      %32 = arith.maximumf %29, %31 : vector<8x1xf32>
      %33 = arith.subf %29, %32 : vector<8x1xf32>
      %34 = math.exp %33 : vector<8x1xf32>
      %35 = vector.broadcast %32 : vector<8x1xf32> to vector<8x8xf32>
      %36 = arith.subf %28, %35 : vector<8x8xf32>
      %37 = math.exp %36 : vector<8x8xf32>
      %c0_17 = arith.constant 0 : index
      %c0_18 = arith.constant 0 : index
      %38 = vector.load %arg8[%c0_17, %c0_18] : memref<8x1xf32, #tpu.memory_space<vmem>>, vector<8x1xf32>
      %39 = arith.mulf %34, %38 : vector<8x1xf32>
      %cst_19 = arith.constant dense<0.000000e+00> : vector<8xf32>
      %40 = vector.multi_reduction <add>, %37, %cst_19 [1] : vector<8x8xf32> to vector<8xf32>
      %41 = vector.shape_cast %40 : vector<8xf32> to vector<8x1xf32>
      %42 = arith.addf %39, %41 : vector<8x1xf32>
      %c0_20 = arith.constant 0 : index
      %c0_21 = arith.constant 0 : index
      %43 = vector.load %arg8[%c0_20, %c0_21] : memref<8x1xf32, #tpu.memory_space<vmem>>, vector<8x1xf32>
      tpu.vector_store %arg8[%c0_20, %c0_21], %42 {strides = array<i32>} : memref<8x1xf32, #tpu.memory_space<vmem>>, vector<8x1xf32>,
      %c0_22 = arith.constant 0 : index
      %c0_23 = arith.constant 0 : index
      %44 = vector.load %arg9[%c0_22, %c0_23] : memref<8x8xf32, #tpu.memory_space<vmem>>, vector<8x8xf32>
      %45 = vector.broadcast %34 : vector<8x1xf32> to vector<8x8xf32>
      %46 = arith.mulf %45, %44 : vector<8x8xf32>
      %cst_24 = arith.constant dense<0.000000e+00> : vector<8x8xf32>
      %47 = tpu.matmul %37, %14, %cst_24 {dimension_numbers = #tpu.dot_dimension_numbers<[1], [0], [0], [1], [0, 0, 1, 1], [], []>} : vector<8x8xf32>, vector<8x8xf32>, vector<8x8xf32> -> vector<8x8xf32>
      %48 = arith.addf %46, %47 : vector<8x8xf32>
      %c0_25 = arith.constant 0 : index
      %c0_26 = arith.constant 0 : index
      %49 = vector.load %arg9[%c0_25, %c0_26] : memref<8x8xf32, #tpu.memory_space<vmem>>, vector<8x8xf32>
      tpu.vector_store %arg9[%c0_25, %c0_26], %48 {strides = array<i32>} : memref<8x8xf32, #tpu.memory_space<vmem>>, vector<8x8xf32>,
      %c0_27 = arith.constant 0 : index
      %c0_28 = arith.constant 0 : index
      %50 = vector.load %arg7[%c0_27, %c0_28] : memref<8x1xf32, #tpu.memory_space<vmem>>, vector<8x1xf32>
      tpu.vector_store %arg7[%c0_27, %c0_28], %32 {strides = array<i32>} : memref<8x1xf32, #tpu.memory_space<vmem>>, vector<8x1xf32>,
      %c0_29 = arith.constant 0 : index
      %c0_30 = arith.constant 0 : index
      %51 = vector.load %arg8[%c0_29, %c0_30] : memref<8x1xf32, #tpu.memory_space<vmem>>, vector<8x1xf32>
      %52 = tpu.reciprocal %51 {approx = true} : vector<8x1xf32> -> vector<8x1xf32>
      %c0_31 = arith.constant 0 : index
      %c0_32 = arith.constant 0 : index
      %53 = vector.load %arg9[%c0_31, %c0_32] : memref<8x8xf32, #tpu.memory_space<vmem>>, vector<8x8xf32>
      %54 = vector.broadcast %52 : vector<8x1xf32> to vector<8x8xf32>
      %55 = arith.mulf %53, %54 : vector<8x8xf32>
      %c0_33 = arith.constant 0 : index
      %c0_34 = arith.constant 0 : index
      %c0_35 = arith.constant 0 : index
      %56 = vector.load %arg6[%c0_33, %c0_34, %c0_35] : memref<1x8x8xf32, #tpu.memory_space<vmem>>, vector<1x8x8xf32>
      %57 = vector.shape_cast %56 : vector<1x8x8xf32> to vector<8x8xf32>
      %58 = vector.shape_cast %55 : vector<8x8xf32> to vector<1x8x8xf32>
      tpu.vector_store %arg6[%c0_33, %c0_34, %c0_35], %58 {strides = array<i32>} : memref<1x8x8xf32, #tpu.memory_space<vmem>>, vector<1x8x8xf32>,
    } else {
    }
    return
  }
  func.func @transform_0(%arg0: i32, %arg1: i32, %arg2: i32) -> (i32, i32, i32) {
    %c0_i32 = arith.constant 0 : i32
    %c0_i32_0 = arith.constant 0 : i32
    return %arg0, %arg1, %c0_i32 : i32, i32, i32
  }
  func.func @transform_1(%arg0: i32, %arg1: i32, %arg2: i32) -> (i32, i32, i32) {
    %0 = arith.minsi %arg2, %arg1 : i32
    %c0_i32 = arith.constant 0 : i32
    %c0_i32_0 = arith.constant 0 : i32
    return %arg0, %0, %c0_i32 : i32, i32, i32
  }
  func.func @transform_2(%arg0: i32, %arg1: i32, %arg2: i32) -> (i32, i32, i32) {
    %0 = arith.minsi %arg2, %arg1 : i32
    %c0_i32 = arith.constant 0 : i32
    %c0_i32_0 = arith.constant 0 : i32
    return %arg0, %0, %c0_i32 : i32, i32, i32
  }
  func.func @transform_3(%arg0: i32, %arg1: i32, %arg2: i32) -> (i32, i32, i32) {
    %c0_i32 = arith.constant 0 : i32
    %c0_i32_0 = arith.constant 0 : i32
    return %arg0, %arg1, %c0_i32 : i32, i32, i32
  }
}

module attributes {stable_mosaic.version = 11 : i64} {
  func.func @_ln_matmul_kernel(%arg0: i32, %arg1: i32, %arg2: memref<16x32xf32, #tpu.memory_space<vmem>>, %arg3: memref<1x32xf32, #tpu.memory_space<vmem>>, %arg4: memref<1x32xf32, #tpu.memory_space<vmem>>, %arg5: memref<32x128xf32, #tpu.memory_space<vmem>>, %arg6: memref<1x128xf32, #tpu.memory_space<vmem>>, %arg7: memref<16x128xf32, #tpu.memory_space<vmem>>, %arg8: memref<16x32xf32, #tpu.memory_space<vmem>>) attributes {dimension_semantics = [#tpu.dimension_semantics<parallel>, #tpu.dimension_semantics<arbitrary>], iteration_bounds = array<i64: 1, 1>, scalar_prefetch = 0 : i64, scratch_operands = 1 : i64, tpu.core_type = #tpu.core_type<tc>, window_params = [{transform_indices = @transform_0, window_bounds = array<i64: 16, 32>}, {pipeline_mode = #tpu.pipeline_mode<synchronous>, transform_indices = @transform_1, window_bounds = array<i64: 1, 32>}, {pipeline_mode = #tpu.pipeline_mode<synchronous>, transform_indices = @transform_2, window_bounds = array<i64: 1, 32>}, {transform_indices = @transform_3, window_bounds = array<i64: 32, 128>}, {transform_indices = @transform_4, window_bounds = array<i64: 1, 128>}, {transform_indices = @transform_5, window_bounds = array<i64: 16, 128>}]} {
    %c0_i32 = arith.constant 0 : i32
    %0 = arith.cmpi eq, %arg1, %c0_i32 : i32
    %1 = arith.extui %0 : i1 to i32
    %c0_i32_0 = arith.constant 0 : i32
    %2 = arith.cmpi ne, %1, %c0_i32_0 : i32
    scf.if %2 {
      %c0_12 = arith.constant 0 : index
      %c0_13 = arith.constant 0 : index
      %23 = vector.load %arg2[%c0_12, %c0_13] : memref<16x32xf32, #tpu.memory_space<vmem>>, vector<16x32xf32>
      %c0_14 = arith.constant 0 : index
      %c0_15 = arith.constant 0 : index
      %24 = vector.load %arg3[%c0_14, %c0_15] : memref<1x32xf32, #tpu.memory_space<vmem>>, vector<1x32xf32>
      %c0_16 = arith.constant 0 : index
      %c0_17 = arith.constant 0 : index
      %25 = vector.load %arg4[%c0_16, %c0_17] : memref<1x32xf32, #tpu.memory_space<vmem>>, vector<1x32xf32>
      %cst_18 = arith.constant dense<0.000000e+00> : vector<16xf32>
      %26 = vector.multi_reduction <add>, %23, %cst_18 [1] : vector<16x32xf32> to vector<16xf32>
      %27 = vector.shape_cast %26 : vector<16xf32> to vector<16x1xf32>
      %cst_19 = arith.constant 3.200000e+01 : f32
      %28 = vector.broadcast %cst_19 : f32 to vector<16x1xf32>
      %29 = arith.divf %27, %28 : vector<16x1xf32>
      %30 = vector.broadcast %29 : vector<16x1xf32> to vector<16x32xf32>
      %31 = arith.subf %23, %30 : vector<16x32xf32>
      %32 = arith.mulf %31, %31 : vector<16x32xf32>
      %cst_20 = arith.constant dense<0.000000e+00> : vector<16xf32>
      %33 = vector.multi_reduction <add>, %32, %cst_20 [1] : vector<16x32xf32> to vector<16xf32>
      %34 = vector.shape_cast %33 : vector<16xf32> to vector<16x1xf32>
      %cst_21 = arith.constant 3.100000e+01 : f32
      %35 = vector.broadcast %cst_21 : f32 to vector<16x1xf32>
      %36 = arith.divf %34, %35 : vector<16x1xf32>
      %37 = math.sqrt %36 : vector<16x1xf32>
      %cst_22 = arith.constant 9.99999997E-7 : f32
      %38 = vector.broadcast %cst_22 : f32 to vector<16x1xf32>
      %39 = arith.addf %37, %38 : vector<16x1xf32>
      %40 = vector.broadcast %39 : vector<16x1xf32> to vector<16x32xf32>
      %41 = arith.divf %31, %40 : vector<16x32xf32>
      %42 = vector.broadcast %24 : vector<1x32xf32> to vector<16x32xf32>
      %43 = arith.mulf %42, %41 : vector<16x32xf32>
      %44 = vector.broadcast %25 : vector<1x32xf32> to vector<16x32xf32>
      %45 = arith.addf %43, %44 : vector<16x32xf32>
      %c0_23 = arith.constant 0 : index
      %c0_24 = arith.constant 0 : index
      %46 = vector.load %arg8[%c0_23, %c0_24] : memref<16x32xf32, #tpu.memory_space<vmem>>, vector<16x32xf32>
      tpu.vector_store %arg8[%c0_23, %c0_24], %45 {strides = array<i32>} : memref<16x32xf32, #tpu.memory_space<vmem>>, vector<16x32xf32>,
    } else {
    }
    %c0 = arith.constant 0 : index
    %c0_1 = arith.constant 0 : index
    %3 = vector.load %arg8[%c0, %c0_1] : memref<16x32xf32, #tpu.memory_space<vmem>>, vector<16x32xf32>
    %c0_2 = arith.constant 0 : index
    %c0_3 = arith.constant 0 : index
    %4 = vector.load %arg5[%c0_2, %c0_3] : memref<32x128xf32, #tpu.memory_space<vmem>>, vector<32x128xf32>
    %cst = arith.constant dense<0.000000e+00> : vector<16x128xf32>
    %5 = tpu.matmul %3, %4, %cst {dimension_numbers = #tpu.dot_dimension_numbers<[1], [0], [0], [1], [0, 0, 1, 1], [], []>} : vector<16x32xf32>, vector<32x128xf32>, vector<16x128xf32> -> vector<16x128xf32>
    %c0_4 = arith.constant 0 : index
    %c0_5 = arith.constant 0 : index
    %6 = vector.load %arg6[%c0_4, %c0_5] : memref<1x128xf32, #tpu.memory_space<vmem>>, vector<1x128xf32>
    %7 = vector.broadcast %6 : vector<1x128xf32> to vector<16x128xf32>
    %8 = arith.addf %5, %7 : vector<16x128xf32>
    %cst_6 = arith.constant 5.000000e-01 : f32
    %9 = vector.broadcast %cst_6 : f32 to vector<16x128xf32>
    %10 = arith.mulf %9, %8 : vector<16x128xf32>
    %11 = arith.mulf %8, %8 : vector<16x128xf32>
    %12 = arith.mulf %8, %11 : vector<16x128xf32>
    %cst_7 = arith.constant 4.471500e-02 : f32
    %13 = vector.broadcast %cst_7 : f32 to vector<16x128xf32>
    %14 = arith.mulf %13, %12 : vector<16x128xf32>
    %15 = arith.addf %8, %14 : vector<16x128xf32>
    %cst_8 = arith.constant 0.797884583 : f32
    %16 = vector.broadcast %cst_8 : f32 to vector<16x128xf32>
    %17 = arith.mulf %16, %15 : vector<16x128xf32>
    %18 = math.tanh %17 : vector<16x128xf32>
    %cst_9 = arith.constant 1.000000e+00 : f32
    %19 = vector.broadcast %cst_9 : f32 to vector<16x128xf32>
    %20 = arith.addf %19, %18 : vector<16x128xf32>
    %21 = arith.mulf %10, %20 : vector<16x128xf32>
    %c0_10 = arith.constant 0 : index
    %c0_11 = arith.constant 0 : index
    %22 = vector.load %arg7[%c0_10, %c0_11] : memref<16x128xf32, #tpu.memory_space<vmem>>, vector<16x128xf32>
    tpu.vector_store %arg7[%c0_10, %c0_11], %21 {strides = array<i32>} : memref<16x128xf32, #tpu.memory_space<vmem>>, vector<16x128xf32>,
    return
  }
  func.func @transform_0(%arg0: i32, %arg1: i32) -> (i32, i32) {
    %c0_i32 = arith.constant 0 : i32
    %c0_i32_0 = arith.constant 0 : i32
    return %arg0, %c0_i32 : i32, i32
  }
  func.func @transform_1(%arg0: i32, %arg1: i32) -> (i32, i32) {
    %c0_i32 = arith.constant 0 : i32
    %c0_i32_0 = arith.constant 0 : i32
    %c0_i32_1 = arith.constant 0 : i32
    return %c0_i32, %c0_i32_0 : i32, i32
  }
  func.func @transform_2(%arg0: i32, %arg1: i32) -> (i32, i32) {
    %c0_i32 = arith.constant 0 : i32
    %c0_i32_0 = arith.constant 0 : i32
    %c0_i32_1 = arith.constant 0 : i32
    return %c0_i32, %c0_i32_0 : i32, i32
  }
  func.func @transform_3(%arg0: i32, %arg1: i32) -> (i32, i32) {
    %c0_i32 = arith.constant 0 : i32
    %c0_i32_0 = arith.constant 0 : i32
    return %c0_i32, %arg1 : i32, i32
  }
  func.func @transform_4(%arg0: i32, %arg1: i32) -> (i32, i32) {
    %c0_i32 = arith.constant 0 : i32
    %c0_i32_0 = arith.constant 0 : i32
    return %c0_i32, %arg1 : i32, i32
  }
  func.func @transform_5(%arg0: i32, %arg1: i32) -> (i32, i32) {
    %c0_i32 = arith.constant 0 : i32
    return %arg0, %arg1 : i32, i32
  }
}

module attributes {stable_mosaic.version = 11 : i64} {
  func.func @_matmul_bias_resid_kernel(%arg0: i32, %arg1: i32, %arg2: i32, %arg3: memref<16x32xf32, #tpu.memory_space<vmem>>, %arg4: memref<32x32xf32, #tpu.memory_space<vmem>>, %arg5: memref<1x32xf32, #tpu.memory_space<vmem>>, %arg6: memref<16x32xf32, #tpu.memory_space<vmem>>, %arg7: memref<16x32xf32, #tpu.memory_space<vmem>>, %arg8: memref<16x32xf32, #tpu.memory_space<vmem>>) attributes {dimension_semantics = [#tpu.dimension_semantics<parallel>, #tpu.dimension_semantics<parallel>, #tpu.dimension_semantics<arbitrary>], iteration_bounds = array<i64: 1, 1, 1>, scalar_prefetch = 0 : i64, scratch_operands = 1 : i64, tpu.core_type = #tpu.core_type<tc>, window_params = [{transform_indices = @transform_0, window_bounds = array<i64: 16, 32>}, {transform_indices = @transform_1, window_bounds = array<i64: 32, 32>}, {transform_indices = @transform_2, window_bounds = array<i64: 1, 32>}, {transform_indices = @transform_3, window_bounds = array<i64: 16, 32>}, {transform_indices = @transform_4, window_bounds = array<i64: 16, 32>}]} {
    %c0_i32 = arith.constant 0 : i32
    %0 = arith.cmpi eq, %arg2, %c0_i32 : i32
    %1 = arith.extui %0 : i1 to i32
    %c0_i32_0 = arith.constant 0 : i32
    %2 = arith.cmpi ne, %1, %c0_i32_0 : i32
    scf.if %2 {
      %cst_10 = arith.constant 0.000000e+00 : f32
      %12 = vector.broadcast %cst_10 : f32 to vector<16x32xf32>
      %c0_11 = arith.constant 0 : index
      %c0_12 = arith.constant 0 : index
      %13 = vector.load %arg8[%c0_11, %c0_12] : memref<16x32xf32, #tpu.memory_space<vmem>>, vector<16x32xf32>
      tpu.vector_store %arg8[%c0_11, %c0_12], %12 {strides = array<i32>} : memref<16x32xf32, #tpu.memory_space<vmem>>, vector<16x32xf32>,
    } else {
    }
    %c0 = arith.constant 0 : index
    %c0_1 = arith.constant 0 : index
    %3 = vector.load %arg8[%c0, %c0_1] : memref<16x32xf32, #tpu.memory_space<vmem>>, vector<16x32xf32>
    %c0_2 = arith.constant 0 : index
    %c0_3 = arith.constant 0 : index
    %4 = vector.load %arg3[%c0_2, %c0_3] : memref<16x32xf32, #tpu.memory_space<vmem>>, vector<16x32xf32>
    %c0_4 = arith.constant 0 : index
    %c0_5 = arith.constant 0 : index
    %5 = vector.load %arg4[%c0_4, %c0_5] : memref<32x32xf32, #tpu.memory_space<vmem>>, vector<32x32xf32>
    %cst = arith.constant dense<0.000000e+00> : vector<16x32xf32>
    %6 = tpu.matmul %4, %5, %cst {dimension_numbers = #tpu.dot_dimension_numbers<[1], [0], [0], [1], [0, 0, 1, 1], [], []>} : vector<16x32xf32>, vector<32x32xf32>, vector<16x32xf32> -> vector<16x32xf32>
    %7 = arith.addf %3, %6 : vector<16x32xf32>
    %c0_6 = arith.constant 0 : index
    %c0_7 = arith.constant 0 : index
    %8 = vector.load %arg8[%c0_6, %c0_7] : memref<16x32xf32, #tpu.memory_space<vmem>>, vector<16x32xf32>
    tpu.vector_store %arg8[%c0_6, %c0_7], %7 {strides = array<i32>} : memref<16x32xf32, #tpu.memory_space<vmem>>, vector<16x32xf32>,
    %c0_i32_8 = arith.constant 0 : i32
    %9 = arith.cmpi eq, %arg2, %c0_i32_8 : i32
    %10 = arith.extui %9 : i1 to i32
    %c0_i32_9 = arith.constant 0 : i32
    %11 = arith.cmpi ne, %10, %c0_i32_9 : i32
    scf.if %11 {
      %c0_10 = arith.constant 0 : index
      %c0_11 = arith.constant 0 : index
      %12 = vector.load %arg8[%c0_10, %c0_11] : memref<16x32xf32, #tpu.memory_space<vmem>>, vector<16x32xf32>
      %c0_12 = arith.constant 0 : index
      %c0_13 = arith.constant 0 : index
      %13 = vector.load %arg5[%c0_12, %c0_13] : memref<1x32xf32, #tpu.memory_space<vmem>>, vector<1x32xf32>
      %14 = vector.broadcast %13 : vector<1x32xf32> to vector<16x32xf32>
      %15 = arith.addf %12, %14 : vector<16x32xf32>
      %c0_14 = arith.constant 0 : index
      %c0_15 = arith.constant 0 : index
      %16 = vector.load %arg6[%c0_14, %c0_15] : memref<16x32xf32, #tpu.memory_space<vmem>>, vector<16x32xf32>
      %17 = arith.addf %15, %16 : vector<16x32xf32>
      %c0_16 = arith.constant 0 : index
      %c0_17 = arith.constant 0 : index
      %18 = vector.load %arg7[%c0_16, %c0_17] : memref<16x32xf32, #tpu.memory_space<vmem>>, vector<16x32xf32>
      tpu.vector_store %arg7[%c0_16, %c0_17], %17 {strides = array<i32>} : memref<16x32xf32, #tpu.memory_space<vmem>>, vector<16x32xf32>,
    } else {
    }
    return
  }
  func.func @transform_0(%arg0: i32, %arg1: i32, %arg2: i32) -> (i32, i32) {
    %c0_i32 = arith.constant 0 : i32
    return %arg0, %arg2 : i32, i32
  }
  func.func @transform_1(%arg0: i32, %arg1: i32, %arg2: i32) -> (i32, i32) {
    %c0_i32 = arith.constant 0 : i32
    return %arg2, %arg1 : i32, i32
  }
  func.func @transform_2(%arg0: i32, %arg1: i32, %arg2: i32) -> (i32, i32) {
    %c0_i32 = arith.constant 0 : i32
    %c0_i32_0 = arith.constant 0 : i32
    return %c0_i32, %arg1 : i32, i32
  }
  func.func @transform_3(%arg0: i32, %arg1: i32, %arg2: i32) -> (i32, i32) {
    %c0_i32 = arith.constant 0 : i32
    return %arg0, %arg1 : i32, i32
  }
  func.func @transform_4(%arg0: i32, %arg1: i32, %arg2: i32) -> (i32, i32) {
    %c0_i32 = arith.constant 0 : i32
    return %arg0, %arg1 : i32, i32
  }
}

module attributes {stable_mosaic.version = 11 : i64} {
  func.func @_matmul_bias_resid_kernel(%arg0: i32, %arg1: i32, %arg2: i32, %arg3: memref<16x128xf32, #tpu.memory_space<vmem>>, %arg4: memref<128x32xf32, #tpu.memory_space<vmem>>, %arg5: memref<1x32xf32, #tpu.memory_space<vmem>>, %arg6: memref<16x32xf32, #tpu.memory_space<vmem>>, %arg7: memref<16x32xf32, #tpu.memory_space<vmem>>, %arg8: memref<16x32xf32, #tpu.memory_space<vmem>>) attributes {dimension_semantics = [#tpu.dimension_semantics<parallel>, #tpu.dimension_semantics<parallel>, #tpu.dimension_semantics<arbitrary>], iteration_bounds = array<i64: 1, 1, 1>, scalar_prefetch = 0 : i64, scratch_operands = 1 : i64, tpu.core_type = #tpu.core_type<tc>, window_params = [{transform_indices = @transform_0, window_bounds = array<i64: 16, 128>}, {transform_indices = @transform_1, window_bounds = array<i64: 128, 32>}, {transform_indices = @transform_2, window_bounds = array<i64: 1, 32>}, {transform_indices = @transform_3, window_bounds = array<i64: 16, 32>}, {transform_indices = @transform_4, window_bounds = array<i64: 16, 32>}]} {
    %c0_i32 = arith.constant 0 : i32
    %0 = arith.cmpi eq, %arg2, %c0_i32 : i32
    %1 = arith.extui %0 : i1 to i32
    %c0_i32_0 = arith.constant 0 : i32
    %2 = arith.cmpi ne, %1, %c0_i32_0 : i32
    scf.if %2 {
      %cst_10 = arith.constant 0.000000e+00 : f32
      %12 = vector.broadcast %cst_10 : f32 to vector<16x32xf32>
      %c0_11 = arith.constant 0 : index
      %c0_12 = arith.constant 0 : index
      %13 = vector.load %arg8[%c0_11, %c0_12] : memref<16x32xf32, #tpu.memory_space<vmem>>, vector<16x32xf32>
      tpu.vector_store %arg8[%c0_11, %c0_12], %12 {strides = array<i32>} : memref<16x32xf32, #tpu.memory_space<vmem>>, vector<16x32xf32>,
    } else {
    }
    %c0 = arith.constant 0 : index
    %c0_1 = arith.constant 0 : index
    %3 = vector.load %arg8[%c0, %c0_1] : memref<16x32xf32, #tpu.memory_space<vmem>>, vector<16x32xf32>
    %c0_2 = arith.constant 0 : index
    %c0_3 = arith.constant 0 : index
    %4 = vector.load %arg3[%c0_2, %c0_3] : memref<16x128xf32, #tpu.memory_space<vmem>>, vector<16x128xf32>
    %c0_4 = arith.constant 0 : index
    %c0_5 = arith.constant 0 : index
    %5 = vector.load %arg4[%c0_4, %c0_5] : memref<128x32xf32, #tpu.memory_space<vmem>>, vector<128x32xf32>
    %cst = arith.constant dense<0.000000e+00> : vector<16x32xf32>
    %6 = tpu.matmul %4, %5, %cst {dimension_numbers = #tpu.dot_dimension_numbers<[1], [0], [0], [1], [0, 0, 1, 1], [], []>} : vector<16x128xf32>, vector<128x32xf32>, vector<16x32xf32> -> vector<16x32xf32>
    %7 = arith.addf %3, %6 : vector<16x32xf32>
    %c0_6 = arith.constant 0 : index
    %c0_7 = arith.constant 0 : index
    %8 = vector.load %arg8[%c0_6, %c0_7] : memref<16x32xf32, #tpu.memory_space<vmem>>, vector<16x32xf32>
    tpu.vector_store %arg8[%c0_6, %c0_7], %7 {strides = array<i32>} : memref<16x32xf32, #tpu.memory_space<vmem>>, vector<16x32xf32>,
    %c0_i32_8 = arith.constant 0 : i32
    %9 = arith.cmpi eq, %arg2, %c0_i32_8 : i32
    %10 = arith.extui %9 : i1 to i32
    %c0_i32_9 = arith.constant 0 : i32
    %11 = arith.cmpi ne, %10, %c0_i32_9 : i32
    scf.if %11 {
      %c0_10 = arith.constant 0 : index
      %c0_11 = arith.constant 0 : index
      %12 = vector.load %arg8[%c0_10, %c0_11] : memref<16x32xf32, #tpu.memory_space<vmem>>, vector<16x32xf32>
      %c0_12 = arith.constant 0 : index
      %c0_13 = arith.constant 0 : index
      %13 = vector.load %arg5[%c0_12, %c0_13] : memref<1x32xf32, #tpu.memory_space<vmem>>, vector<1x32xf32>
      %14 = vector.broadcast %13 : vector<1x32xf32> to vector<16x32xf32>
      %15 = arith.addf %12, %14 : vector<16x32xf32>
      %c0_14 = arith.constant 0 : index
      %c0_15 = arith.constant 0 : index
      %16 = vector.load %arg6[%c0_14, %c0_15] : memref<16x32xf32, #tpu.memory_space<vmem>>, vector<16x32xf32>
      %17 = arith.addf %15, %16 : vector<16x32xf32>
      %c0_16 = arith.constant 0 : index
      %c0_17 = arith.constant 0 : index
      %18 = vector.load %arg7[%c0_16, %c0_17] : memref<16x32xf32, #tpu.memory_space<vmem>>, vector<16x32xf32>
      tpu.vector_store %arg7[%c0_16, %c0_17], %17 {strides = array<i32>} : memref<16x32xf32, #tpu.memory_space<vmem>>, vector<16x32xf32>,
    } else {
    }
    return
  }
  func.func @transform_0(%arg0: i32, %arg1: i32, %arg2: i32) -> (i32, i32) {
    %c0_i32 = arith.constant 0 : i32
    return %arg0, %arg2 : i32, i32
  }
  func.func @transform_1(%arg0: i32, %arg1: i32, %arg2: i32) -> (i32, i32) {
    %c0_i32 = arith.constant 0 : i32
    return %arg2, %arg1 : i32, i32
  }
  func.func @transform_2(%arg0: i32, %arg1: i32, %arg2: i32) -> (i32, i32) {
    %c0_i32 = arith.constant 0 : i32
    %c0_i32_0 = arith.constant 0 : i32
    return %c0_i32, %arg1 : i32, i32
  }
  func.func @transform_3(%arg0: i32, %arg1: i32, %arg2: i32) -> (i32, i32) {
    %c0_i32 = arith.constant 0 : i32
    return %arg0, %arg1 : i32, i32
  }
  func.func @transform_4(%arg0: i32, %arg1: i32, %arg2: i32) -> (i32, i32) {
    %c0_i32 = arith.constant 0 : i32
    return %arg0, %arg1 : i32, i32
  }
}

module attributes {stable_mosaic.version = 11 : i64} {
  func.func @_layernorm_kernel(%arg0: i32, %arg1: memref<16x32xf32, #tpu.memory_space<vmem>>, %arg2: memref<1x32xf32, #tpu.memory_space<vmem>>, %arg3: memref<1x32xf32, #tpu.memory_space<vmem>>, %arg4: memref<16x32xf32, #tpu.memory_space<vmem>>) attributes {dimension_semantics = [#tpu.dimension_semantics<parallel>], iteration_bounds = array<i64: 1>, scalar_prefetch = 0 : i64, scratch_operands = 0 : i64, tpu.core_type = #tpu.core_type<tc>, window_params = [{transform_indices = @transform_0, window_bounds = array<i64: 16, 32>}, {pipeline_mode = #tpu.pipeline_mode<synchronous>, transform_indices = @transform_1, window_bounds = array<i64: 1, 32>}, {pipeline_mode = #tpu.pipeline_mode<synchronous>, transform_indices = @transform_2, window_bounds = array<i64: 1, 32>}, {transform_indices = @transform_3, window_bounds = array<i64: 16, 32>}]} {
    %c0 = arith.constant 0 : index
    %c0_0 = arith.constant 0 : index
    %0 = vector.load %arg1[%c0, %c0_0] : memref<16x32xf32, #tpu.memory_space<vmem>>, vector<16x32xf32>
    %c0_1 = arith.constant 0 : index
    %c0_2 = arith.constant 0 : index
    %1 = vector.load %arg2[%c0_1, %c0_2] : memref<1x32xf32, #tpu.memory_space<vmem>>, vector<1x32xf32>
    %c0_3 = arith.constant 0 : index
    %c0_4 = arith.constant 0 : index
    %2 = vector.load %arg3[%c0_3, %c0_4] : memref<1x32xf32, #tpu.memory_space<vmem>>, vector<1x32xf32>
    %cst = arith.constant dense<0.000000e+00> : vector<16xf32>
    %3 = vector.multi_reduction <add>, %0, %cst [1] : vector<16x32xf32> to vector<16xf32>
    %4 = vector.shape_cast %3 : vector<16xf32> to vector<16x1xf32>
    %cst_5 = arith.constant 3.200000e+01 : f32
    %5 = vector.broadcast %cst_5 : f32 to vector<16x1xf32>
    %6 = arith.divf %4, %5 : vector<16x1xf32>
    %7 = vector.broadcast %6 : vector<16x1xf32> to vector<16x32xf32>
    %8 = arith.subf %0, %7 : vector<16x32xf32>
    %9 = arith.mulf %8, %8 : vector<16x32xf32>
    %cst_6 = arith.constant dense<0.000000e+00> : vector<16xf32>
    %10 = vector.multi_reduction <add>, %9, %cst_6 [1] : vector<16x32xf32> to vector<16xf32>
    %11 = vector.shape_cast %10 : vector<16xf32> to vector<16x1xf32>
    %cst_7 = arith.constant 3.100000e+01 : f32
    %12 = vector.broadcast %cst_7 : f32 to vector<16x1xf32>
    %13 = arith.divf %11, %12 : vector<16x1xf32>
    %14 = math.sqrt %13 : vector<16x1xf32>
    %cst_8 = arith.constant 9.99999997E-7 : f32
    %15 = vector.broadcast %cst_8 : f32 to vector<16x1xf32>
    %16 = arith.addf %14, %15 : vector<16x1xf32>
    %17 = vector.broadcast %16 : vector<16x1xf32> to vector<16x32xf32>
    %18 = arith.divf %8, %17 : vector<16x32xf32>
    %19 = vector.broadcast %1 : vector<1x32xf32> to vector<16x32xf32>
    %20 = arith.mulf %19, %18 : vector<16x32xf32>
    %21 = vector.broadcast %2 : vector<1x32xf32> to vector<16x32xf32>
    %22 = arith.addf %20, %21 : vector<16x32xf32>
    %c0_9 = arith.constant 0 : index
    %c0_10 = arith.constant 0 : index
    %23 = vector.load %arg4[%c0_9, %c0_10] : memref<16x32xf32, #tpu.memory_space<vmem>>, vector<16x32xf32>
    tpu.vector_store %arg4[%c0_9, %c0_10], %22 {strides = array<i32>} : memref<16x32xf32, #tpu.memory_space<vmem>>, vector<16x32xf32>,
    return
  }
  func.func @transform_0(%arg0: i32) -> (i32, i32) {
    %c0_i32 = arith.constant 0 : i32
    %c0_i32_0 = arith.constant 0 : i32
    return %arg0, %c0_i32 : i32, i32
  }
  func.func @transform_1(%arg0: i32) -> (i32, i32) {
    %c0_i32 = arith.constant 0 : i32
    %c0_i32_0 = arith.constant 0 : i32
    %c0_i32_1 = arith.constant 0 : i32
    return %c0_i32, %c0_i32_0 : i32, i32
  }
  func.func @transform_2(%arg0: i32) -> (i32, i32) {
    %c0_i32 = arith.constant 0 : i32
    %c0_i32_0 = arith.constant 0 : i32
    %c0_i32_1 = arith.constant 0 : i32
    return %c0_i32, %c0_i32_0 : i32, i32
  }
  func.func @transform_3(%arg0: i32) -> (i32, i32) {
    %c0_i32 = arith.constant 0 : i32
    %c0_i32_0 = arith.constant 0 : i32
    return %arg0, %c0_i32 : i32, i32
  }
}

</mosaic_0001>

<bundles_post_ra>
// kernel: gpt2_forward.14
= control target key start
LH: loop header
LB: loop body
LE: loop exit
PB: predicated region body
PF: predicated region fallthrough
CT: control target
= control target key end

     0   :  { %vm28_vm0 = vcmask 261120   ;;  %s321_s0 = inlined_call_operand.vmem [shape: f32[16,32], index: 0, kind: input, shape index: {}]   ;;  %s322_s3 = inlined_call_operand.vmem [shape: f32[32,128], index: 3, kind: input, shape index: {}]   ;;  %s323_s1 = inlined_call_operand.vmem [shape: f32[1,32], index: 1, kind: input, shape index: {}]   ;;  %s324_s2 = inlined_call_operand.vmem [shape: f32[1,32], index: 2, kind: input, shape index: {}]   ;;  %s325_s4 = inlined_call_operand.vmem [shape: f32[1,128], index: 4, kind: input, shape index: {}]   ;;  %s326_s5 = inlined_call_operand.vmem [shape: f32[16,128], index: 5, kind: output, shape index: {}]  }
   0x1   :  { %v24_v0 = vld [vmem:[%s321_s0] sm:$0xff]  ;;  %v25_v1 = vld [vmem:[%s321_s0 + $0x8] sm:$0xff]  ;;  %v93_v16 = vld [vmem:[%s322_s3 + $0x10] sm:$0xff] }
   0x2   :  { %v29_v2 = vsel %vm28_vm0, %v24_v0, 0.0  ;;  %v32_v3 = vsel %vm28_vm0, %v25_v1, 0.0  ;;  %v91_v14 = vld [vmem:[%s322_s3] sm:$0xff]  ;;  %v92_v15 = vld [vmem:[%s322_s3 + $0x8] sm:$0xff]  ;;  %v94_v18 = vld [vmem:[%s322_s3 + $0x18] sm:$0xff] }
   0x3   :  { %30 = vadd.xlane.f32.xlu0 %v29_v2  ;;  %v230_v17 = vpack.c.bf16 %v92_v15, %v91_v14  ;;  %v234_v19 = vpack.c.bf16 %v94_v18, %v93_v16  ;;  %v208_v37 = vld [vmem:[%s323_s1] ss:$0 sm:$0xff] }
   0x4   :  { %v209_v39 = vld [vmem:[%s324_s2] ss:$0 sm:$0xff] }
   0x5   :  { %231 = vmatprep.subr.bf16.mxu0 %v230_v17  ;;  %v210_v48 = vld [vmem:[%s325_s4] ss:$0 sm:$0xff] }
   0x6   :  { %233 = vmatpush3.bf16.msra.mxu0 %v230_v17 }
   0x7   :  { %33 = vadd.xlane.f32.xlu0 %v32_v3  ;;  %235 = vmatprep.subr.bf16.mxu0 %v234_v19 }
   0xa   :  { %237 = vmatpush3.bf16.msra.mxu0 %v234_v19 }
  0x90   :  { %v31_v4 = vpop.xlane.xlu0 %30 }
  0x91   :  { %v36_v5 = vmul.f32 0.03125, %v31_v4 }
  0x93   :  { %v38_v6 = vsub.f32 %v24_v0, %v36_v5 }
  0x94   :  { %v34_v7 = vpop.xlane.xlu0 %33 }
  0x95   :  { %v37_v8 = vmul.f32 0.03125, %v34_v7  ;;  %v40_v9 = vmul.f32 %v38_v6, %v38_v6 }
  0x97   :  { %v39_v10 = vsub.f32 %v25_v1, %v37_v8  ;;  %v42_v11 = vsel %vm28_vm0, %v40_v9, 0.0 }
  0x98   :  { %43 = vadd.xlane.f32.xlu1 %v42_v11 }
  0x99   :  { %v41_v12 = vmul.f32 %v39_v10, %v39_v10 }
  0x9b   :  { %v45_v13 = vsel %vm28_vm0, %v41_v12, 0.0 }
  0x9c   :  { %46 = vadd.xlane.f32.xlu1 %v45_v13 }
 0x125   :  { %v44_v20 = vpop.xlane.xlu1 %43 }
 0x126   :  { %v49_v21 = vmul.f32 0.032258064, %v44_v20 }
 0x128   :  { %238 = vrsqrt.f32 %v49_v21  ;;  %vm53_vm1 = vcmp.eq.f32.partialorder %v49_v21, inf  ;;  %v56_v26 = vand.u32 2147483648, %v49_v21  ;;  %vm55_vm2 = vcmp.eq.f32.partialorder %v49_v21, 0.0 }
 0x129   :  { %v47_v22 = vpop.xlane.xlu1 %46 }
 0x12a   :  { %v50_v23 = vmul.f32 0.032258064, %v47_v22 }
 0x12c   :  { %240 = vrsqrt.f32 %v50_v23  ;;  %vm60_vm3 = vcmp.eq.f32.partialorder %v50_v23, inf  ;;  %v63_v32 = vand.u32 2147483648, %v50_v23  ;;  %vm62_vm4 = vcmp.eq.f32.partialorder %v50_v23, 0.0 }
 0x132   :  { %v239_v24 = vpop.eup %238 }
 0x133   :  { %v52_v25 = vmul.f32 %v239_v24, %v49_v21 }
 0x135   :  { %v54_v27 = vsel %vm53_vm1, %v49_v21, %v52_v25 }
 0x136   :  { %v241_v28 = vpop.eup %240  ;;  %v57_v29 = vsel %vm55_vm2, %v56_v26, %v54_v27 }
 0x137   :  { %v65_v30 = vadd.f32 1e-06, %v57_v29  ;;  %v59_v31 = vmul.f32 %v241_v28, %v50_v23 }
 0x139   :  { %242 = vrcp.f32 %v65_v30  ;;  %v61_v33 = vsel %vm60_vm3, %v50_v23, %v59_v31 }
 0x13a   :  { %v64_v34 = vsel %vm62_vm4, %v63_v32, %v61_v33 }
 0x13b   :  { %v66_v35 = vadd.f32 1e-06, %v64_v34 }
 0x13d   :  { %244 = vrcp.f32 %v66_v35 }
 0x143   :  { %v243_v36 = vpop.eup %242 }
 0x144   :  { %v68_v38 = vmul.f32 %v243_v36, %v38_v6 }
 0x146   :  { %v77_v40 = vmul.f32 %v208_v37, %v68_v38 }
 0x147   :  { %v245_v41 = vpop.eup %244 }
 0x148   :  { %v70_v42 = vmul.f32 %v245_v41, %v39_v10  ;;  %v85_v43 = vadd.f32 %v209_v39, %v77_v40 }
 0x14a   :  { %v78_v44 = vmul.f32 %v208_v37, %v70_v42  ;;  %87 = vst.msk [vmem:[#allocation2] sm:$0xff] %vm28_vm0, %v85_v43 }
 0x14c   :  { %v86_v45 = vadd.f32 %v209_v39, %v78_v44 }
 0x14e   :  { %88 = vst.msk [vmem:[#allocation2 + $0x8] sm:$0xff] %vm28_vm0, %v86_v45 }
 0x151   :  { %v89_v46 = vld [vmem:[#allocation2] sm:$0xff] }
 0x152   :  { %227 = vmatprep.mubr.msk.f32.mxu0 %vm28_vm0, %v89_v46 }
 0x155   :  { %v90_v47 = vld [vmem:[#allocation2 + $0x8] sm:$0xff] }
 0x156   :  { %228 = vmatmul.mubr.msk.f32.vlgmr.msra.gmra.mrb[0].mxu0 %vm28_vm0, %v90_v47 }
 0x229   :  { %v229_v49 = vpop.f32.mrb[0].mxu0 }
 0x22a   :  { %v181_v50 = vadd.f32 %v229_v49, %v210_v48  ;;  %v175_v51 = vpop.f32.mrb[1].mxu0 }
 0x22b   :  { %v176_v52 = vadd.f32 %v210_v48, %v175_v51 }
 0x22c   :  { %v187_v53 = vmul.f32 %v181_v50, %v181_v50  ;;  %v185_v1 = vmul.f32 0.5, %v181_v50 }
 0x22d   :  { %v186_v54 = vmul.f32 %v176_v52, %v176_v52  ;;  %v184_v3 = vmul.f32 0.5, %v176_v52 }
 0x22e   :  { %v189_v55 = vmul.f32 %v187_v53, %v181_v50 }
 0x22f   :  { %v188_v56 = vmul.f32 %v186_v54, %v176_v52 }
 0x230   :  { %v191_v57 = vmul.f32 0.044715, %v189_v55 }
 0x231   :  { %v190_v58 = vmul.f32 0.044715, %v188_v56 }
 0x232   :  { %v193_v59 = vadd.f32 %v191_v57, %v181_v50 }
 0x233   :  { %v192_v60 = vadd.f32 %v190_v58, %v176_v52 }
 0x234   :  { %v195_v61 = vmul.f32 0.7978846, %v193_v59 }
 0x235   :  { %v194_v62 = vmul.f32 0.7978846, %v192_v60 }
 0x236   :  { %246 = vtanh.f32 %v195_v61 }
 0x237   :  { %248 = vtanh.f32 %v194_v62 }
 0x240   :  { %v247_v63 = vpop.eup %246 }
 0x241   :  { %v249_v0 = vpop.eup %248  ;;  %v199_v2 = vadd.f32 1.0, %v247_v63 }
 0x242   :  { %v198_v4 = vadd.f32 1.0, %v249_v0 }
 0x243   :  { %v201_v5 = vmul.f32 %v199_v2, %v185_v1 }
 0x244   :  { %v200_v6 = vmul.f32 %v198_v4, %v184_v3 }
 0x245   :  { %203 = vst [vmem:[%s326_s5 + $0x8] sm:$0xff] %v201_v5 }
 0x246   :  { %202 = vst [vmem:[%s326_s5] sm:$0xff] %v200_v6 }

// kernel: gpt2_forward.11
= control target key start
LH: loop header
LB: loop body
LE: loop exit
PB: predicated region body
PF: predicated region fallthrough
CT: control target
= control target key end

     0   :  { %vm28_vm0 = vcmask 261120   ;;  %vm184_vm5 = vcmask 785408   ;;  %s300_s0 = inlined_call_operand.vmem [shape: f32[16,32], index: 0, kind: input, shape index: {}]   ;;  %s301_s3 = inlined_call_operand.vmem [shape: f32[32,96], index: 3, kind: input, shape index: {}]   ;;  %s302_s1 = inlined_call_operand.vmem [shape: f32[1,32], index: 1, kind: input, shape index: {}]   ;;  %s303_s2 = inlined_call_operand.vmem [shape: f32[1,32], index: 2, kind: input, shape index: {}]   ;;  %s304_s4 = inlined_call_operand.vmem [shape: f32[1,96], index: 4, kind: input, shape index: {}]   ;;  %s305_s5 = inlined_call_operand.vmem [shape: f32[16,96], index: 5, kind: output, shape index: {}]  }
   0x1   :  { %v24_v0 = vld [vmem:[%s300_s0] sm:$0xff]  ;;  %v25_v1 = vld [vmem:[%s300_s0 + $0x8] sm:$0xff]  ;;  %v93_v16 = vld [vmem:[%s301_s3 + $0x10] sm:$0xff] }
   0x2   :  { %v29_v2 = vsel %vm28_vm0, %v24_v0, 0.0  ;;  %v32_v3 = vsel %vm28_vm0, %v25_v1, 0.0  ;;  %v91_v14 = vld [vmem:[%s301_s3] sm:$0xff]  ;;  %v92_v15 = vld [vmem:[%s301_s3 + $0x8] sm:$0xff]  ;;  %v94_v18 = vld [vmem:[%s301_s3 + $0x18] sm:$0xff] }
   0x3   :  { %30 = vadd.xlane.f32.xlu0 %v29_v2  ;;  %v213_v17 = vpack.c.bf16 %v92_v15, %v91_v14  ;;  %v217_v19 = vpack.c.bf16 %v94_v18, %v93_v16  ;;  %v191_v37 = vld [vmem:[%s302_s1] ss:$0 sm:$0xff] }
   0x4   :  { %v192_v39 = vld [vmem:[%s303_s2] ss:$0 sm:$0xff] }
   0x5   :  { %214 = vmatprep.subr.bf16.mxu0 %v213_v17  ;;  %v193_v48 = vld [vmem:[%s304_s4] ss:$0 sm:$0xff] }
   0x6   :  { %216 = vmatpush3.bf16.msra.mxu0 %v213_v17 }
   0x7   :  { %33 = vadd.xlane.f32.xlu0 %v32_v3  ;;  %218 = vmatprep.subr.bf16.mxu0 %v217_v19 }
   0xa   :  { %220 = vmatpush3.bf16.msra.mxu0 %v217_v19 }
  0x90   :  { %v31_v4 = vpop.xlane.xlu0 %30 }
  0x91   :  { %v36_v5 = vmul.f32 0.03125, %v31_v4 }
  0x93   :  { %v38_v6 = vsub.f32 %v24_v0, %v36_v5 }
  0x94   :  { %v34_v7 = vpop.xlane.xlu0 %33 }
  0x95   :  { %v37_v8 = vmul.f32 0.03125, %v34_v7  ;;  %v40_v9 = vmul.f32 %v38_v6, %v38_v6 }
  0x97   :  { %v39_v10 = vsub.f32 %v25_v1, %v37_v8  ;;  %v42_v11 = vsel %vm28_vm0, %v40_v9, 0.0 }
  0x98   :  { %43 = vadd.xlane.f32.xlu1 %v42_v11 }
  0x99   :  { %v41_v12 = vmul.f32 %v39_v10, %v39_v10 }
  0x9b   :  { %v45_v13 = vsel %vm28_vm0, %v41_v12, 0.0 }
  0x9c   :  { %46 = vadd.xlane.f32.xlu1 %v45_v13 }
 0x125   :  { %v44_v20 = vpop.xlane.xlu1 %43 }
 0x126   :  { %v49_v21 = vmul.f32 0.032258064, %v44_v20 }
 0x128   :  { %221 = vrsqrt.f32 %v49_v21  ;;  %vm53_vm1 = vcmp.eq.f32.partialorder %v49_v21, inf  ;;  %v56_v26 = vand.u32 2147483648, %v49_v21  ;;  %vm55_vm2 = vcmp.eq.f32.partialorder %v49_v21, 0.0 }
 0x129   :  { %v47_v22 = vpop.xlane.xlu1 %46 }
 0x12a   :  { %v50_v23 = vmul.f32 0.032258064, %v47_v22 }
 0x12c   :  { %223 = vrsqrt.f32 %v50_v23  ;;  %vm60_vm3 = vcmp.eq.f32.partialorder %v50_v23, inf  ;;  %v63_v32 = vand.u32 2147483648, %v50_v23  ;;  %vm62_vm4 = vcmp.eq.f32.partialorder %v50_v23, 0.0 }
 0x132   :  { %v222_v24 = vpop.eup %221 }
 0x133   :  { %v52_v25 = vmul.f32 %v222_v24, %v49_v21 }
 0x135   :  { %v54_v27 = vsel %vm53_vm1, %v49_v21, %v52_v25 }
 0x136   :  { %v224_v28 = vpop.eup %223  ;;  %v57_v29 = vsel %vm55_vm2, %v56_v26, %v54_v27 }
 0x137   :  { %v65_v30 = vadd.f32 1e-06, %v57_v29  ;;  %v59_v31 = vmul.f32 %v224_v28, %v50_v23 }
 0x139   :  { %225 = vrcp.f32 %v65_v30  ;;  %v61_v33 = vsel %vm60_vm3, %v50_v23, %v59_v31 }
 0x13a   :  { %v64_v34 = vsel %vm62_vm4, %v63_v32, %v61_v33 }
 0x13b   :  { %v66_v35 = vadd.f32 1e-06, %v64_v34 }
 0x13d   :  { %227 = vrcp.f32 %v66_v35 }
 0x143   :  { %v226_v36 = vpop.eup %225 }
 0x144   :  { %v68_v38 = vmul.f32 %v226_v36, %v38_v6 }
 0x146   :  { %v77_v40 = vmul.f32 %v191_v37, %v68_v38 }
 0x147   :  { %v228_v41 = vpop.eup %227 }
 0x148   :  { %v70_v42 = vmul.f32 %v228_v41, %v39_v10  ;;  %v85_v43 = vadd.f32 %v192_v39, %v77_v40 }
 0x14a   :  { %v78_v44 = vmul.f32 %v191_v37, %v70_v42  ;;  %87 = vst.msk [vmem:[#allocation2] sm:$0xff] %vm28_vm0, %v85_v43 }
 0x14c   :  { %v86_v45 = vadd.f32 %v192_v39, %v78_v44 }
 0x14e   :  { %88 = vst.msk [vmem:[#allocation2 + $0x8] sm:$0xff] %vm28_vm0, %v86_v45 }
 0x151   :  { %v89_v46 = vld [vmem:[#allocation2] sm:$0xff] }
 0x152   :  { %210 = vmatprep.mubr.msk.f32.mxu0 %vm28_vm0, %v89_v46 }
 0x155   :  { %v90_v47 = vld [vmem:[#allocation2 + $0x8] sm:$0xff] }
 0x156   :  { %211 = vmatmul.mubr.msk.f32.vlgmr.msra.gmra.mrb[0].mxu0 %vm28_vm0, %v90_v47 }
 0x229   :  { %v212_v49 = vpop.f32.mrb[0].mxu0 }
 0x22a   :  { %v181_v50 = vadd.f32 %v212_v49, %v193_v48  ;;  %v175_v51 = vpop.f32.mrb[1].mxu0 }
 0x22b   :  { %v176_v52 = vadd.f32 %v193_v48, %v175_v51 }
 0x22c   :  { %186 = vst.msk [vmem:[%s305_s5 + $0x8] sm:$0xff] %vm184_vm5, %v181_v50 }
 0x22d   :  { %185 = vst.msk [vmem:[%s305_s5] sm:$0xff] %vm184_vm5, %v176_v52 }

// kernel: gpt2_forward.13
= control target key start
LH: loop header
LB: loop body
LE: loop exit
PB: predicated region body
PF: predicated region fallthrough
CT: control target
= control target key end

     0   :  { %vm21_vm0 = vcmask 261120   ;;  %v171_v3 = vmov 0.0   ;;  %s238_s1 = inlined_call_operand.vmem [shape: f32[32,32], index: 1, kind: input, shape index: {}]   ;;  %s239_s0 = inlined_call_operand.vmem [shape: f32[16,32], index: 0, kind: input, shape index: {}]   ;;  %s240_s2 = inlined_call_operand.vmem [shape: f32[1,32], index: 2, kind: input, shape index: {}]   ;;  %s241_s3 = inlined_call_operand.vmem [shape: f32[16,32], index: 3, kind: input, shape index: {}]   ;;  %s242_s4 = inlined_call_operand.vmem [shape: f32[16,32], index: 4, kind: output, shape index: {}]  }
   0x1   :  { %v28_v0 = vld [vmem:[%s238_s1] sm:$0xff]  ;;  %v29_v1 = vld [vmem:[%s238_s1 + $0x8] sm:$0xff]  ;;  %v30_v2 = vld [vmem:[%s238_s1 + $0x10] sm:$0xff]  ;;  %23 = vst.msk [vmem:[#allocation2 + $0x8] sm:$0xff] %vm21_vm0, %v171_v3 }
   0x2   :  { %22 = vst.msk [vmem:[#allocation2] sm:$0xff] %vm21_vm0, %v171_v3  ;;  %v162_v4 = vpack.c.bf16 %v29_v1, %v28_v0  ;;  %v31_v5 = vld [vmem:[%s238_s1 + $0x18] sm:$0xff]  ;;  %v26_v6 = vld [vmem:[%s239_s0] sm:$0xff]  ;;  %v27_v8 = vld [vmem:[%s239_s0 + $0x8] sm:$0xff] }
   0x3   :  { %v166_v7 = vpack.c.bf16 %v31_v5, %v30_v2  ;;  %159 = vmatprep.mubr.msk.f32.mxu0 %vm21_vm0, %v26_v6  ;;  %v144_v15 = vld [vmem:[%s240_s2] ss:$0 sm:$0xff]  ;;  %v133_v17 = vld [vmem:[%s241_s3 + $0x8] sm:$0xff] }
   0x4   :  { %163 = vmatprep.subr.bf16.mxu0 %v162_v4  ;;  %v132_v20 = vld [vmem:[%s241_s3] sm:$0xff] }
   0x5   :  { %165 = vmatpush3.bf16.msra.mxu0 %v162_v4 }
   0x6   :  { %167 = vmatprep.subr.bf16.mxu0 %v166_v7 }
   0x8   :  { %v25_v9 = vld [vmem:[#allocation2 + $0x8] sm:$0xff] }
   0x9   :  { %169 = vmatpush3.bf16.msra.mxu0 %v166_v7  ;;  %v24_v10 = vld [vmem:[#allocation2] sm:$0xff] }
   0xc   :  { %160 = vmatmul.mubr.msk.f32.vlgmr.msra.gmra.mrb[0].mxu0 %vm21_vm0, %v27_v8 }
  0xdf   :  { %v161_v11 = vpop.f32.mrb[0].mxu0 }
  0xe0   :  { %v115_v12 = vadd.f32 %v161_v11, %v25_v9  ;;  %v105_v13 = vpop.f32.mrb[1].mxu0 }
  0xe1   :  { %v114_v14 = vadd.f32 %v105_v13, %v24_v10 }
  0xe2   :  { %117 = vst.msk [vmem:[#allocation2 + $0x8] sm:$0xff] %vm21_vm0, %v115_v12 }
  0xe3   :  { %116 = vst.msk [vmem:[#allocation2] sm:$0xff] %vm21_vm0, %v114_v14 }
  0xe9   :  { %v122_v16 = vld [vmem:[#allocation2 + $0x8] sm:$0xff] }
  0xea   :  { %v131_v18 = vadd.f32 %v144_v15, %v122_v16  ;;  %v121_v19 = vld [vmem:[#allocation2] sm:$0xff] }
  0xeb   :  { %v130_v21 = vadd.f32 %v144_v15, %v121_v19 }
  0xec   :  { %v135_v22 = vadd.f32 %v133_v17, %v131_v18 }
  0xed   :  { %v134_v23 = vadd.f32 %v132_v20, %v130_v21 }
  0xee   :  { %137 = vst.msk [vmem:[%s242_s4 + $0x8] sm:$0xff] %vm21_vm0, %v135_v22 }
  0xef   :  { %136 = vst.msk [vmem:[%s242_s4] sm:$0xff] %vm21_vm0, %v134_v23 }

// kernel: gpt2_forward.12
= control target key start
LH: loop header
LB: loop body
LE: loop exit
PB: predicated region body
PF: predicated region fallthrough
CT: control target
= control target key end

     0   :  { %s925_s12 = smov 0   ;;  %s927_s13 = smov 0   ;;  %s982_s0 = inlined_call_operand.vmem [shape: f32[8,8,8], index: 0, kind: input, shape index: {}]   ;;  %s983_s1 = inlined_call_operand.vmem [shape: f32[8,8,8], index: 1, kind: input, shape index: {}]   ;;  %s984_s2 = inlined_call_operand.vmem [shape: f32[8,8,8], index: 2, kind: input, shape index: {}]   ;;  %s985_s3 = inlined_call_operand.vmem [shape: f32[8,8,8], index: 3, kind: output, shape index: {}]  }
   0x1   :  { %s929_s14 = smov 0  }
   0x2 LB: > { %s32_s15 = sadd.s32 1, %s895_s13  ;;  %p814_p0 = scmp.ge.s32.totalorder %s899_s14, 1  ;;  %s899_s14 = sphi %s929_s14, %s13_s14   ;;  %s895_s13 = sphi %s927_s13, %s987_s13   ;;  %s891_s12 = sphi %s925_s12, %s986_s12  }
   0x3   : > { %p34_p1 = scmp.ge.s32.totalorder %s32_s15, 8  ;;  %p206_p2 = scmp.lt.s32.totalorder %s899_s14, 9 }
   0x5   : > { %s989_s15 = smov (%p34_p1, %s32_s15), 0  ;;  %p207_p3 = pnand %p814_p0, %p206_p2 }
   0x6   : > { %p252_p4 = scmp.lt.s32.totalorder (!%p207_p3), %s891_s12, 7  ;;  %vm295_vm0 = vcmask (!%p207_p3), 64512   ;;  %v901_v0 = vmov (!%p207_p3), 0.0   ;;  %vm902_vm1 = vmmov (!%p207_p3), 0   ;;  %vm292_vm2 = vcmask (!%p207_p3), 7168  }
   0x7   : > { %210 = sbr.rel (%p207_p3) target bundleno = 819 (0x333), region = 32  ;;  %831 = vmatprep.subr.mxu0 (!%p207_p3), %v901_v0  ;;  %296 = vst.msk [vmem:[#allocation4] sm:$0xff] (!%p207_p3), %vm295_vm0, %v901_v0  ;;  %833 = vmatprep.mubr.msk.f32.mxu0 (!%p207_p3), %vm902_vm1, %v901_v0  ;;  %v903_v3 = vmov (!%p207_p3), -1e+10   ;;  %v575_v4 = vlaneseq (!%p207_p3)  ;;  %v904_v12 = vmov (!%p207_p3), 0  }
   0x8   : > { %836 = vmatprep.subr.mxu1 (!%p207_p3), %v901_v0  ;;  %838 = vmatprep.mubr.msk.f32.mxu1 (!%p207_p3), %vm902_vm1, %v901_v0  ;;  %293 = vst.msk [vmem:[#allocation2] sm:$0xff] (!%p207_p3), %vm292_vm2, %v903_v3  ;;  %294 = vst.msk [vmem:[#allocation3] sm:$0xff] (!%p207_p3), %vm292_vm2, %v901_v0 }
   0x9   : > { %v576_v5 = vshrl.u32 (!%p207_p3), %v575_v4, 7  ;;  %v581_v6 = vand.u32 (!%p207_p3), 127, %v575_v4  ;;  %869 = vset.pattern.permute.xlu0 (!%p207_p3), %v904_v12  ;;  %870 = vset.pattern.permute.xlu1 (!%p207_p3), %v904_v12 }
   0xb   : > { %vm584_vm3 = vcmp.le.s32.totalorder (!%p207_p3), %v581_v6, %v576_v5 }
   0xe   : > { %s991_s12 = smov (!%p252_p4, %s891_s12), 7  ;;  %v610_v31 = vld [vmem:[#allocation4] sm:$0xff] }
   0xf   : > { %s944_s16 = sshll.u32 %s991_s12, 3  ;;  %v586_v13 = vld [vmem:[#allocation2] sm:$0xff]  ;;  %v602_v25 = vld [vmem:[#allocation3] sm:$0xff] }
  0x10   : > { %s267_s19 = scalar_lea.vmem %s983_s1, %s944_s16  ;;  %s258_s22 = scalar_lea.vmem %s982_s0, %s944_s16 }
  0x11   : > { %v494_v1 = vld [vmem:[%s267_s19] sm:$0xff]  ;;  %s278_s25 = scalar_lea.vmem %s984_s2, %s944_s16  ;;  %s287_s28 = scalar_lea.vmem %s985_s3, %s944_s16 }
  0x12   : > { %832 = vmatpush3.xpose.msk.msra.mxu0 %vm295_vm0, %v494_v1  ;;  %v493_v2 = vld [vmem:[%s258_s22] sm:$0xff] }
  0x13   : > { %v495_v17 = vld [vmem:[%s278_s25] sm:$0xff] }
  0x14   : > { %837 = vmatpush3.msra.mxu1 %v495_v17 }
  0x15   : > { %834 = vmatmul.mubr.msk.f32.vlgmr.msra.gmra.mrb[0].mxu0 %vm295_vm0, %v493_v2 }
  0xe8   : > { %v569_v7 = vpop.f32.mrb[0].mxu0 }
  0xe9   : > { %v573_v8 = vmul.f32 0.35355338, %v569_v7  ;;  %v835_v9 = vpop.f32.mrb[1].mxu0 }
  0xeb   : > { %v585_v10 = vsel %vm584_vm3, %v573_v8, -1e+10 }
  0xec   : > { %v587_v11 = vsel %vm295_vm0, %v585_v10, -inf }
  0xed   : > { %588 = vmax.xlane.f32.xlu0 %v587_v11 }
 0x17a   : > { %v589_v14 = vpop.xlane.xlu0 %588 }
 0x17b   : > { %v590_v15 = vmax.f32 %v586_v13, %v589_v14 }
 0x17d   : > { %v591_v16 = vsub.f32 %v586_v13, %v590_v15  ;;  %692 = vst.msk [vmem:[#allocation2] sm:$0xff] %vm292_vm2, %v590_v15  ;;  %596 = vperm.xlu0 %869, %v590_v15  }
 0x17f   : > { %v592_v23 = vmul.f32 1.442695, %v591_v16 }
 0x1fc   : > { %v597_v18 = vpop.permute.xlu0 %596 }
 0x1fd   : > { %v599_v19 = vsub.f32 %v585_v10, %v597_v18 }
 0x1ff   : > { %v600_v20 = vmul.f32 1.442695, %v599_v19 }
 0x201   : > { %871 = vpow2.f32 %v600_v20 }
 0x202   : > { %873 = vpow2.f32 %v592_v23 }
 0x20b   : > { %v872_v21 = vpop.eup %871 }
 0x20c   : > { %839 = vmatmul.mubr.msk.f32.vlgmr.msra.gmra.mrb[0].mxu1 %vm295_vm0, %v872_v21  ;;  %v604_v22 = vsel %vm295_vm0, %v872_v21, 0.0  ;;  %v874_v24 = vpop.eup %873 }
 0x20d   : > { %605 = vadd.xlane.f32.xlu1 %v604_v22  ;;  %v603_v26 = vmul.f32 %v874_v24, %v602_v25 }
 0x21e   : > { %613 = vperm.xlu1 %870, %v874_v24  }
 0x29a   : > { %v606_v27 = vpop.xlane.xlu1 %605 }
 0x29b   : > { %v607_v28 = vadd.f32 %v606_v27, %v603_v26 }
 0x29d   : > { %609 = vst.msk [vmem:[#allocation3] sm:$0xff] %vm292_vm2, %v607_v28 }
 0x29e   : > { %v614_v32 = vpop.permute.xlu1 %613 }
 0x29f   : > { %v616_v33 = vmul.f32 %v614_v32, %v610_v31 }
 0x2a4   : > { %v693_v29 = vld [vmem:[#allocation3] sm:$0xff] }
 0x2a5   : > { %875 = vrcp.f32 %v693_v29 }
 0x2af   : > { %v876_v30 = vpop.eup %875 }
 0x2b0   : > { %698 = vperm.xlu1 %870, %v876_v30  }
 0x2df   : > { %v686_v34 = vpop.f32.mrb[0].mxu1 }
 0x2e0   : > { %v690_v35 = vadd.f32 %v686_v34, %v616_v33  ;;  %v840_v36 = vpop.f32.mrb[1].mxu1 }
 0x2e2   : > { %691 = vst.msk [vmem:[#allocation4] sm:$0xff] %vm295_vm0, %v690_v35 }
 0x2e9   : > { %v695_v37 = vld [vmem:[#allocation4] sm:$0xff] }
 0x32f   : > { %v699_v38 = vpop.permute.xlu1 %698 }
 0x330   : > { %v701_v39 = vmul.f32 %v699_v38, %v695_v37 }
 0x332   : > { %702 = vst.msk [vmem:[%s287_s28] sm:$0xff] %vm295_vm0, %v701_v39 }
 0x333 PF: > { %s13_s14 = sadd.s32 1, %s899_s14   ;;  %s986_s12 = smov %s895_s13 }
 0x334   : > { %p10_p5 = scmp.ge.s32.totalorder %s13_s14, 10   ;;  %s987_s13 = smov %s989_s15 }
 0x336   :  { %12 = sbr.rel (!%p10_p5) target bundleno = 2 (0x2), region = 80 }

// kernel: gpt2_forward.15
= control target key start
LH: loop header
LB: loop body
LE: loop exit
PB: predicated region body
PF: predicated region fallthrough
CT: control target
= control target key end

     0   :  { %vm21_vm0 = vcmask 261120   ;;  %v235_v3 = vmov 0.0   ;;  %s336_s1 = inlined_call_operand.vmem [shape: f32[128,32], index: 1, kind: input, shape index: {}]   ;;  %s337_s0 = inlined_call_operand.vmem [shape: f32[16,128], index: 0, kind: input, shape index: {}]   ;;  %s338_s2 = inlined_call_operand.vmem [shape: f32[1,32], index: 2, kind: input, shape index: {}]   ;;  %s339_s3 = inlined_call_operand.vmem [shape: f32[16,32], index: 3, kind: input, shape index: {}]   ;;  %s340_s4 = inlined_call_operand.vmem [shape: f32[16,32], index: 4, kind: output, shape index: {}]  }
   0x1   :  { %v28_v0 = vld [vmem:[%s336_s1] sm:$0xff]  ;;  %v29_v1 = vld [vmem:[%s336_s1 + $0x8] sm:$0xff]  ;;  %v30_v2 = vld [vmem:[%s336_s1 + $0x10] sm:$0xff]  ;;  %23 = vst.msk [vmem:[#allocation2 + $0x8] sm:$0xff] %vm21_vm0, %v235_v3 }
   0x2   :  { %22 = vst.msk [vmem:[#allocation2] sm:$0xff] %vm21_vm0, %v235_v3  ;;  %v202_v4 = vpack.c.bf16 %v29_v1, %v28_v0  ;;  %v31_v5 = vld [vmem:[%s336_s1 + $0x18] sm:$0xff]  ;;  %v32_v7 = vld [vmem:[%s336_s1 + $0x20] sm:$0xff]  ;;  %v33_v8 = vld [vmem:[%s336_s1 + $0x28] sm:$0xff] }
   0x3   :  { %v206_v6 = vpack.c.bf16 %v31_v5, %v30_v2  ;;  %v210_v9 = vpack.c.bf16 %v33_v8, %v32_v7  ;;  %v26_v10 = vld [vmem:[%s337_s0] sm:$0xff]  ;;  %v34_v11 = vld [vmem:[%s336_s1 + $0x30] sm:$0xff]  ;;  %v35_v12 = vld [vmem:[%s336_s1 + $0x38] sm:$0xff] }
   0x4   :  { %203 = vmatprep.subr.bf16.mxu0 %v202_v4  ;;  %199 = vmatprep.mubr.f32.mxu0 %v26_v10  ;;  %v214_v13 = vpack.c.bf16 %v35_v12, %v34_v11  ;;  %v36_v14 = vld [vmem:[%s336_s1 + $0x40] sm:$0xff]  ;;  %v37_v15 = vld [vmem:[%s336_s1 + $0x48] sm:$0xff]  ;;  %v38_v17 = vld [vmem:[%s336_s1 + $0x50] sm:$0xff] }
   0x5   :  { %205 = vmatpush3.bf16.msra.mxu0 %v202_v4  ;;  %v218_v16 = vpack.c.bf16 %v37_v15, %v36_v14  ;;  %v39_v18 = vld [vmem:[%s336_s1 + $0x58] sm:$0xff]  ;;  %v40_v20 = vld [vmem:[%s336_s1 + $0x60] sm:$0xff]  ;;  %v41_v21 = vld [vmem:[%s336_s1 + $0x68] sm:$0xff] }
   0x6   :  { %207 = vmatprep.subr.bf16.mxu0 %v206_v6  ;;  %v222_v19 = vpack.c.bf16 %v39_v18, %v38_v17  ;;  %v226_v22 = vpack.c.bf16 %v41_v21, %v40_v20  ;;  %v42_v23 = vld [vmem:[%s336_s1 + $0x70] sm:$0xff]  ;;  %v43_v24 = vld [vmem:[%s336_s1 + $0x78] sm:$0xff]  ;;  %v27_v26 = vld [vmem:[%s337_s0 + $0x8] sm:$0xff] }
   0x7   :  { %v230_v25 = vpack.c.bf16 %v43_v24, %v42_v23  ;;  %v148_v33 = vld [vmem:[%s338_s2] ss:$0 sm:$0xff]  ;;  %v139_v35 = vld [vmem:[%s339_s3 + $0x8] sm:$0xff] }
   0x8   :  { %v25_v27 = vld [vmem:[#allocation2 + $0x8] sm:$0xff]  ;;  %v138_v37 = vld [vmem:[%s339_s3] sm:$0xff] }
   0x9   :  { %209 = vmatpush3.bf16.msra.mxu0 %v206_v6  ;;  %v24_v28 = vld [vmem:[#allocation2] sm:$0xff] }
   0xa   :  { %211 = vmatprep.subr.bf16.mxu0 %v210_v9 }
   0xd   :  { %213 = vmatpush3.bf16.msra.mxu0 %v210_v9 }
   0xe   :  { %215 = vmatprep.subr.bf16.mxu0 %v214_v13 }
  0x11   :  { %217 = vmatpush3.bf16.msra.mxu0 %v214_v13 }
  0x12   :  { %219 = vmatprep.subr.bf16.mxu0 %v218_v16 }
  0x15   :  { %221 = vmatpush3.bf16.msra.mxu0 %v218_v16 }
  0x16   :  { %223 = vmatprep.subr.bf16.mxu0 %v222_v19 }
  0x19   :  { %225 = vmatpush3.bf16.msra.mxu0 %v222_v19 }
  0x1a   :  { %227 = vmatprep.subr.bf16.mxu0 %v226_v22 }
  0x1d   :  { %229 = vmatpush3.bf16.msra.mxu0 %v226_v22 }
  0x1e   :  { %231 = vmatprep.subr.bf16.mxu0 %v230_v25 }
  0x21   :  { %233 = vmatpush3.bf16.msra.mxu0 %v230_v25 }
  0x24   :  { %200 = vmatmul.mubr.f32.vlgmr.msra.gmra.mrb[0].mxu0 %v27_v26 }
  0xf7   :  { %v201_v29 = vpop.f32.mrb[0].mxu0 }
  0xf8   :  { %v120_v30 = vadd.f32 %v201_v29, %v25_v27  ;;  %v110_v31 = vpop.f32.mrb[1].mxu0 }
  0xf9   :  { %v119_v32 = vadd.f32 %v110_v31, %v24_v28 }
  0xfa   :  { %123 = vst.msk [vmem:[#allocation2 + $0x8] sm:$0xff] %vm21_vm0, %v120_v30 }
  0xfb   :  { %122 = vst.msk [vmem:[#allocation2] sm:$0xff] %vm21_vm0, %v119_v32 }
 0x101   :  { %v128_v34 = vld [vmem:[#allocation2 + $0x8] sm:$0xff] }
 0x102   :  { %v137_v36 = vadd.f32 %v148_v33, %v128_v34  ;;  %v127_v38 = vld [vmem:[#allocation2] sm:$0xff] }
 0x103   :  { %v136_v39 = vadd.f32 %v148_v33, %v127_v38 }
 0x104   :  { %v141_v40 = vadd.f32 %v139_v35, %v137_v36 }
 0x105   :  { %v140_v41 = vadd.f32 %v138_v37, %v136_v39 }
 0x106   :  { %143 = vst.msk [vmem:[%s340_s4 + $0x8] sm:$0xff] %vm21_vm0, %v141_v40 }
 0x107   :  { %142 = vst.msk [vmem:[%s340_s4] sm:$0xff] %vm21_vm0, %v140_v41 }

// kernel: gpt2_forward.21
= control target key start
LH: loop header
LB: loop body
LE: loop exit
PB: predicated region body
PF: predicated region fallthrough
CT: control target
= control target key end

     0   :  { %vm19_vm0 = vcmask 261120   ;;  %s186_s0 = inlined_call_operand.vmem [shape: f32[16,32], index: 0, kind: input, shape index: {}]   ;;  %s187_s1 = inlined_call_operand.vmem [shape: f32[1,32], index: 1, kind: input, shape index: {}]   ;;  %s188_s2 = inlined_call_operand.vmem [shape: f32[1,32], index: 2, kind: input, shape index: {}]   ;;  %s189_s3 = inlined_call_operand.hbm [shape: f32[16,32], index: 3, kind: output, shape index: {}]  }
   0x1   :  { %v15_v0 = vld [vmem:[%s186_s0] sm:$0xff]  ;;  %v16_v1 = vld [vmem:[%s186_s0 + $0x8] sm:$0xff] }
   0x2   :  { %8 = vsyncpa [#allocation3], 0  ;;  %v20_v2 = vsel %vm19_vm0, %v15_v0, 0.0  ;;  %v23_v3 = vsel %vm19_vm0, %v16_v1, 0.0  ;;  %v96_v31 = vld [vmem:[%s187_s1] ss:$0 sm:$0xff] }
   0x3   :  { %21 = vadd.xlane.f32.xlu0 %v20_v2  ;;  %v97_v33 = vld [vmem:[%s188_s2] ss:$0 sm:$0xff]  ;;  %s133_s19 = smov [#allocation2]  }
   0x4   :  { %s85_s20 = sshll.u32 %s133_s19, 4  ;;  %s86_s20 = int_to_ptr.vmem [resolvable:$true] %s85_s20 }
   0x5   :  { %s109_s21 = scalar_lea.vmem %s86_s20, 256  ;;  %p114_p1 = scmp.lt.s32.totalorder %s86_s20, %s86_s20 }
   0x6   :  { %p110_p0 = scmp.ne.s32.totalorder %s86_s20, %s109_s21  ;;  %p115_p2 = scmp.lt.s32.totalorder %s109_s21, %s109_s21 }
   0x7   :  { %24 = vadd.xlane.f32.xlu0 %v23_v3 }
   0x8   :  { %p116_p3 = por %p115_p2, %p114_p1 }
   0xa   :  { %p117_p4 = pnand %p116_p3, %p110_p0 }
  0x90   :  { %v22_v4 = vpop.xlane.xlu0 %21 }
  0x91   :  { %v27_v5 = vmul.f32 0.03125, %v22_v4 }
  0x93   :  { %v29_v6 = vsub.f32 %v15_v0, %v27_v5 }
  0x94   :  { %v25_v7 = vpop.xlane.xlu0 %24 }
  0x95   :  { %v28_v8 = vmul.f32 0.03125, %v25_v7  ;;  %v31_v9 = vmul.f32 %v29_v6, %v29_v6 }
  0x97   :  { %v30_v10 = vsub.f32 %v16_v1, %v28_v8  ;;  %v33_v11 = vsel %vm19_vm0, %v31_v9, 0.0 }
  0x98   :  { %34 = vadd.xlane.f32.xlu1 %v33_v11 }
  0x99   :  { %v32_v12 = vmul.f32 %v30_v10, %v30_v10 }
  0x9b   :  { %v36_v13 = vsel %vm19_vm0, %v32_v12, 0.0 }
  0x9c   :  { %37 = vadd.xlane.f32.xlu1 %v36_v13 }
 0x125   :  { %v35_v14 = vpop.xlane.xlu1 %34 }
 0x126   :  { %v40_v15 = vmul.f32 0.032258064, %v35_v14 }
 0x128   :  { %101 = vrsqrt.f32 %v40_v15  ;;  %vm44_vm1 = vcmp.eq.f32.partialorder %v40_v15, inf  ;;  %v47_v20 = vand.u32 2147483648, %v40_v15  ;;  %vm46_vm2 = vcmp.eq.f32.partialorder %v40_v15, 0.0 }
 0x129   :  { %v38_v16 = vpop.xlane.xlu1 %37 }
 0x12a   :  { %v41_v17 = vmul.f32 0.032258064, %v38_v16 }
 0x12c   :  { %103 = vrsqrt.f32 %v41_v17  ;;  %vm51_vm3 = vcmp.eq.f32.partialorder %v41_v17, inf  ;;  %v54_v26 = vand.u32 2147483648, %v41_v17  ;;  %vm53_vm4 = vcmp.eq.f32.partialorder %v41_v17, 0.0 }
 0x132   :  { %v102_v18 = vpop.eup %101 }
 0x133   :  { %v43_v19 = vmul.f32 %v102_v18, %v40_v15 }
 0x135   :  { %v45_v21 = vsel %vm44_vm1, %v40_v15, %v43_v19 }
 0x136   :  { %v104_v22 = vpop.eup %103  ;;  %v48_v23 = vsel %vm46_vm2, %v47_v20, %v45_v21 }
 0x137   :  { %v56_v24 = vadd.f32 1e-06, %v48_v23  ;;  %v50_v25 = vmul.f32 %v104_v22, %v41_v17 }
 0x139   :  { %105 = vrcp.f32 %v56_v24  ;;  %v52_v27 = vsel %vm51_vm3, %v41_v17, %v50_v25 }
 0x13a   :  { %v55_v28 = vsel %vm53_vm4, %v54_v26, %v52_v27 }
 0x13b   :  { %v57_v29 = vadd.f32 1e-06, %v55_v28 }
 0x13d   :  { %107 = vrcp.f32 %v57_v29 }
 0x143   :  { %v106_v30 = vpop.eup %105 }
 0x144   :  { %v59_v32 = vmul.f32 %v106_v30, %v29_v6 }
 0x146   :  { %v68_v34 = vmul.f32 %v96_v31, %v59_v32 }
 0x147   :  { %v108_v35 = vpop.eup %107 }
 0x148   :  { %v61_v36 = vmul.f32 %v108_v35, %v30_v10  ;;  %v76_v37 = vadd.f32 %v97_v33, %v68_v34 }
 0x14a   :  { %v69_v38 = vmul.f32 %v96_v31, %v61_v36  ;;  %78 = vst.msk [vmem:[#allocation2] sm:$0xff] %vm19_vm0, %v76_v37 }
 0x14c   :  { %v77_v39 = vadd.f32 %v97_v33, %v69_v38 }
 0x14e   :  { %79 = vst.msk [vmem:[#allocation2 + $0x8] sm:$0xff] %vm19_vm0, %v77_v39 }
 0x14f   :  { %120 = shalt.err (!%p117_p4)
}
 0x150   :  { %s121_s22 = scalar_lea.hbm %s189_s3, 256 }
 0x151   :  { %p122_p5 = scmp.ne.s32.totalorder %s189_s3, %s121_s22  ;;  %p125_p6 = scmp.lt.u32.totalorder %s121_s22, %s189_s3 }
 0x153   :  { %p127_p7 = pnand %p125_p6, %p122_p5 }
 0x155   :  { %130 = shalt.err (!%p127_p7)
}
 0x156   :  { %s134_s27 = smov 128   ;;  %s135_s28 = smov 8  }
 0x157   :  { %91 = dma.vmem_to_hbm [thread:$0]  %s86_s20, 256, %s189_s3, [#allocation3], %s134_s27, %s134_s27, %s135_s28  }
 0x158   :  { %131 = dma.done.wait [#allocation3], 256  }
 0x159   :  { %132 = vsyncadd [#allocation3], 4294967040 }
 0x15a   :  { %95 = vsyncpa [#allocation3], 1 }

</bundles_post_ra>
